<compile_context>
chip_gen: v7x
topology: tpu7x:2x2x1
jax: 0.10.0
libtpu: 0.0.40
codegen_flags: <defaults>
</compile_context>

<pallas_src>
import functools
import math

import jax
import jax.numpy as jnp
from jax.experimental import pallas as pl
from jax.experimental.pallas import tpu as pltpu

F32_EPS = float(jnp.finfo(jnp.float32).eps)  # matches torch F.rms_norm default eps


def lambda_init_fn(depth: int) -> float:
    return 0.8 - 0.6 * math.exp(-0.3 * depth)


# ---------------------------------------------------------------------------
# Fused Pallas kernel: QKV proj + rms/rotary + dual attention + diff + out proj
# ---------------------------------------------------------------------------
def _fused_diff_attn_kernel(lam_ref, x_ref, wqkv_ref, wo_ref, avg_ref, swap_ref,
                            cos_ref, sin_ref, o_ref, *,
                            n_q: int, n_kv: int, head_dims: int, eps: float,
                            q_dims: int, k_dims: int):
    S = x_ref.shape[0]
    qhd = head_dims // 2          # per-branch q/k head dim
    r = n_q // n_kv               # GQA group size
    qk_dims = q_dims + k_dims

    lam = lam_ref[0, 0]           # lambda_full scalar (SMEM)

    # Fused QKV projection: lane-dense (S, q_dims + k_dims + v_dims) slab.
    qkv = jnp.dot(x_ref[...], wqkv_ref[...], preferred_element_type=jnp.float32)
    qk = qkv[:, :qk_dims]

    # Batched rms-norm over every qhd-wide head block: per-head mean-of-squares via
    # one MXU matmul against a constant block-diagonal averaging matrix.
    ms = jnp.dot(qk * qk, avg_ref[...], preferred_element_type=jnp.float32)
    normed = qk * jax.lax.rsqrt(ms + eps)

    # Batched rotary across the whole qk slab.  swap_ref is a block-diagonal signed
    # permutation sending per-head [x1 | x2] -> [x2 | -x1]; cos/sin tables are
    # pre-replicated to slab width and the q columns carry the 1/sqrt(qhd) scale.
    swapped = jnp.dot(normed, swap_ref[...], preferred_element_type=jnp.float32)
    rot = normed * cos_ref[...] + swapped * sin_ref[...]

    # Per-kv-head V augmented with a ones column so the softmax denominator falls
    # out of the PV matmul (no separate cross-lane row-sum per attend).
    ones_col = jnp.ones((S, 1), jnp.float32)
    v_aug = [jnp.concatenate(
                 [qkv[:, qk_dims + g * head_dims: qk_dims + (g + 1) * head_dims],
                  ones_col], axis=1)
             for g in range(n_kv)]

    def attend(qh, kh, vaug):
        # Single K=qhd dot: rotated halves are lane-adjacent in `rot`, and the
        # attention scale is already baked into qh via the cos/sin tables.
        s = jax.lax.dot_general(qh, kh, (((1,), (1,)), ((), ())),
                                preferred_element_type=jnp.float32)
        m = jnp.max(s, axis=-1, keepdims=True)
        p = jnp.exp(s - m)
        pv = jnp.dot(p, vaug, preferred_element_type=jnp.float32)
        # TODO(synk): pl.reciprocal(..., approx=True) would route this to the EUP;
        # kept exact so the 1e-4 correctness check stays tight.
        return pv[:, :head_dims] * (1.0 / pv[:, head_dims:head_dims + 1])

    wo = wo_ref[...]              # (hidden, hidden), pre-scaled by (1 - lambda_init)
    o_acc = jnp.zeros((S, wo.shape[1]), jnp.float32)

    # Static unrolled loop over query heads; per-head output flows straight into a
    # split-Wo accumulation (no masked stores, no scratch round-trip).
    for h in range(n_q):
        g = h // r
        q1 = rot[:, (2 * h) * qhd:(2 * h + 1) * qhd]
        q2 = rot[:, (2 * h + 1) * qhd:(2 * h + 2) * qhd]
        k1 = rot[:, q_dims + (2 * g) * qhd: q_dims + (2 * g + 1) * qhd]
        k2 = rot[:, q_dims + (2 * g + 1) * qhd: q_dims + (2 * g + 2) * qhd]
        a1 = attend(q1, k1, v_aug[g])
        a2 = attend(q2, k2, v_aug[g])
        diff = a1 - lam * a2
        dms = jnp.mean(diff * diff, axis=-1, keepdims=True)
        dn = diff * jax.lax.rsqrt(dms + eps)
        o_acc = o_acc + jnp.dot(dn, wo[h * head_dims:(h + 1) * head_dims, :],
                                preferred_element_type=jnp.float32)

    o_ref[...] = o_acc            # single full-width, lane-dense store


# ---------------------------------------------------------------------------
# Plain-JAX glue (parameter setup, rotary tables, constant matrices, lambda)
# ---------------------------------------------------------------------------
def rms_norm(x):
    ms = jnp.mean(x * x, axis=-1, keepdims=True)
    return x * jax.lax.rsqrt(ms + F32_EPS)


def rotary(x, x_pos, base):
    # x: (1, S, H, D) — identical math to the PyTorch Rotary module (batch must be 1)
    d_full = x.shape[-1]
    inv_freq = 1.0 / (base ** (jnp.arange(0, d_full, 2, dtype=jnp.float32) / d_full))
    t = x_pos.astype(jnp.float32)[0]                 # (S,)
    freqs = jnp.outer(t, inv_freq)                   # (S, D//2)
    cos = jnp.cos(freqs)[None, :, None, :]
    sin = jnp.sin(freqs)[None, :, None, :]
    d = d_full // 2
    x1, x2 = x[..., :d], x[..., d:]
    y1 = x1 * cos + x2 * sin
    y2 = -x1 * sin + x2 * cos
    return jnp.concatenate([y1, y2], axis=3)


def init_params(key, layer_idx, n_q_heads, n_kv_heads, head_dims, rotary_base):
    hidden = head_dims * n_q_heads
    qhd = head_dims // 2
    q_dims = 2 * n_q_heads * qhd
    k_dims = 2 * n_kv_heads * qhd
    v_dims = n_kv_heads * head_dims
    ks = jax.random.split(key, 8)
    params = {
        "Wq": jax.random.normal(ks[0], (q_dims, hidden), jnp.float32) * 0.02,
        "Wk": jax.random.normal(ks[1], (k_dims, hidden), jnp.float32) * 0.02,
        "Wv": jax.random.normal(ks[2], (v_dims, hidden), jnp.float32) * 0.02,
        # NOTE: the PyTorch module zero-initializes out_proj; a nonzero deterministic
        # init is used here so the output-projection path is actually exercised.
        "Wo": jax.random.normal(ks[3], (hidden, hidden), jnp.float32) * 0.02,
        "lambda_q1": jax.random.normal(ks[4], (qhd,), jnp.float32) * 0.1,
        "lambda_k1": jax.random.normal(ks[5], (qhd,), jnp.float32) * 0.1,
        "lambda_q2": jax.random.normal(ks[6], (qhd,), jnp.float32) * 0.1,
        "lambda_k2": jax.random.normal(ks[7], (qhd,), jnp.float32) * 0.1,
    }
    cfg = dict(layer_idx=layer_idx, n_q_heads=n_q_heads, n_kv_heads=n_kv_heads,
               head_dims=head_dims, rotary_base=rotary_base)
    return params, cfg


def diff_flex_self_attention(params, cfg, x, x_pos):
    B, S, hidden = x.shape
    assert B == 1, "Rotary in the reference module only supports batch == 1"
    n_q, n_kv, hd = cfg["n_q_heads"], cfg["n_kv_heads"], cfg["head_dims"]
    qhd = hd // 2
    d = qhd // 2
    q_dims = 2 * n_q * qhd
    k_dims = 2 * n_kv * qhd
    qk_dims = q_dims + k_dims
    scale = 1.0 / math.sqrt(qhd)         # flex_attention default: 1/sqrt(q.size(-1))
    lam_init = lambda_init_fn(cfg["layer_idx"])

    # Rotary tables, pre-replicated to slab width.  The attention score scale is
    # folded into the q columns (it cannot go into Wq: rms-norm would cancel it).
    inv_freq = 1.0 / (cfg["rotary_base"] **
                      (jnp.arange(0, qhd, 2, dtype=jnp.float32) / qhd))
    t = x_pos.astype(jnp.float32)[0]                 # (S,)
    freqs = jnp.outer(t, inv_freq)                   # (S, d)
    cos, sin = jnp.cos(freqs), jnp.sin(freqs)
    cos_full = jnp.concatenate([jnp.tile(cos, (1, q_dims // d)) * scale,
                                jnp.tile(cos, (1, k_dims // d))], axis=1)
    sin_full = jnp.concatenate([jnp.tile(sin, (1, q_dims // d)) * scale,
                                jnp.tile(sin, (1, k_dims // d))], axis=1)

    # Constant block-diagonal helpers (tiny, built once per call).
    n_heads_qk = qk_dims // qhd
    avg = jnp.kron(jnp.eye(n_heads_qk, dtype=jnp.float32),
                   jnp.full((qhd, qhd), 1.0 / qhd, jnp.float32))
    blk = jnp.block([[jnp.zeros((d, d), jnp.float32), -jnp.eye(d, dtype=jnp.float32)],
                     [jnp.eye(d, dtype=jnp.float32), jnp.zeros((d, d), jnp.float32)]])
    swap = jnp.kron(jnp.eye(n_heads_qk, dtype=jnp.float32), blk)

    # lambda_full scalar.
    lam1 = jnp.exp(jnp.sum(params["lambda_q1"] * params["lambda_k1"]))
    lam2 = jnp.exp(jnp.sum(params["lambda_q2"] * params["lambda_k2"]))
    lam_full = (lam1 - lam2 + lam_init).reshape(1, 1).astype(jnp.float32)

    # Fused, pre-transposed weights; (1 - lambda_init) folded into Wo^T.
    wqkv_t = jnp.concatenate([params["Wq"], params["Wk"], params["Wv"]], axis=0).T
    wo_t = params["Wo"].T * (1.0 - lam_init)

    kernel = functools.partial(
        _fused_diff_attn_kernel,
        n_q=n_q, n_kv=n_kv, head_dims=hd, eps=F32_EPS,
        q_dims=q_dims, k_dims=k_dims)

    out = pl.pallas_call(
        kernel,
        out_shape=jax.ShapeDtypeStruct((S, hidden), jnp.float32),
        in_specs=[
            pl.BlockSpec(memory_space=pltpu.MemorySpace.SMEM),   # lambda_full (1,1)
            pl.BlockSpec(memory_space=pltpu.MemorySpace.VMEM),   # x         (S, hidden)
            pl.BlockSpec(memory_space=pltpu.MemorySpace.VMEM),   # Wqkv^T    (hidden, 256)
            pl.BlockSpec(memory_space=pltpu.MemorySpace.VMEM),   # Wo^T      (hidden, hidden)
            pl.BlockSpec(memory_space=pltpu.MemorySpace.VMEM),   # avg       (qk, qk)
            pl.BlockSpec(memory_space=pltpu.MemorySpace.VMEM),   # swap      (qk, qk)
            pl.BlockSpec(memory_space=pltpu.MemorySpace.VMEM),   # cos_full  (S, qk)
            pl.BlockSpec(memory_space=pltpu.MemorySpace.VMEM),   # sin_full  (S, qk)
        ],
        out_specs=pl.BlockSpec(memory_space=pltpu.MemorySpace.VMEM),
    )(lam_full, x.reshape(S, hidden), wqkv_t, wo_t, avg, swap, cos_full, sin_full)

    return out.reshape(1, S, hidden)


# ---------------------------------------------------------------------------
# Pure-JAX reference (for correctness check)
# ---------------------------------------------------------------------------
def reference_forward(params, cfg, x, x_pos):
    B, S, hidden = x.shape
    n_q, n_kv, hd = cfg["n_q_heads"], cfg["n_kv_heads"], cfg["head_dims"]
    qhd = hd // 2
    r = n_q // n_kv
    lam_init = lambda_init_fn(cfg["layer_idx"])

    x2d = x[0]
    k = (x2d @ params["Wk"].T).reshape(1, S, 2 * n_kv, qhd)
    v = (x2d @ params["Wv"].T).reshape(1, S, n_kv, hd)
    q = (x2d @ params["Wq"].T).reshape(1, S, 2 * n_q, qhd)
    k = rotary(rms_norm(k), x_pos, cfg["rotary_base"])
    q = rotary(rms_norm(q), x_pos, cfg["rotary_base"])
    q = q.reshape(1, S, n_q, 2, qhd)
    k = k.reshape(1, S, n_kv, 2, qhd)
    q1 = jnp.transpose(q[:, :, :, 0, :], (0, 2, 1, 3))
    q2 = jnp.transpose(q[:, :, :, 1, :], (0, 2, 1, 3))
    k1 = jnp.transpose(k[:, :, :, 0, :], (0, 2, 1, 3))
    k2 = jnp.transpose(k[:, :, :, 1, :], (0, 2, 1, 3))
    vh = jnp.transpose(v, (0, 2, 1, 3))

    def sdpa(qh, kh, vv):
        kh = jnp.repeat(kh, r, axis=1)
        vv = jnp.repeat(vv, r, axis=1)
        s = jnp.einsum("bhqd,bhkd->bhqk", qh, kh) / math.sqrt(qhd)
        p = jax.nn.softmax(s, axis=-1)
        return jnp.einsum("bhqk,bhkd->bhqd", p, vv)

    a1 = sdpa(q1, k1, vh)
    a2 = sdpa(q2, k2, vh)
    lam1 = jnp.exp(jnp.sum(params["lambda_q1"] * params["lambda_k1"]))
    lam2 = jnp.exp(jnp.sum(params["lambda_q2"] * params["lambda_k2"]))
    lam_full = lam1 - lam2 + lam_init
    attn = rms_norm(a1 - lam_full * a2) * (1.0 - lam_init)
    attn = jnp.transpose(attn, (0, 2, 1, 3)).reshape(1, S, hidden)
    return attn @ params["Wo"].T


if __name__ == "__main__":
    layer_idx, n_q_heads, n_kv_heads, head_dims = 2, 4, 2, 32
    rotary_base = 10000.0
    hidden = head_dims * n_q_heads      # 128
    B, S = 1, 16                        # Rotary in the reference module requires B == 1

    key = jax.random.PRNGKey(0)
    pkey, xkey = jax.random.split(key)
    params, cfg = init_params(pkey, layer_idx, n_q_heads, n_kv_heads, head_dims,
                              rotary_base)
    x = jax.random.normal(xkey, (B, S, hidden), jnp.float32)
    x_pos = jnp.arange(S, dtype=jnp.int32)[None, :]

    out = diff_flex_self_attention(params, cfg, x, x_pos)
    out = jax.block_until_ready(out)

    ref = reference_forward(params, cfg, x, x_pos)
    assert out.shape == (B, S, hidden), out.shape
    if not jnp.allclose(out, ref, atol=1e-4, rtol=1e-4):
        raise AssertionError(
            f"mismatch vs reference, max abs err = {float(jnp.max(jnp.abs(out - ref)))}")
    print("KERNEL_OK")
</pallas_src>

<mosaic_0001>
module attributes {stable_mosaic.version = 11 : i64} {
  func.func @_fused_diff_attn_kernel(%arg0: memref<1x1xf32, #tpu.memory_space<smem>>, %arg1: memref<16x128xf32, #tpu.memory_space<vmem>>, %arg2: memref<128x256xf32, #tpu.memory_space<vmem>>, %arg3: memref<128x128xf32, #tpu.memory_space<vmem>>, %arg4: memref<192x192xf32, #tpu.memory_space<vmem>>, %arg5: memref<192x192xf32, #tpu.memory_space<vmem>>, %arg6: memref<16x192xf32, #tpu.memory_space<vmem>>, %arg7: memref<16x192xf32, #tpu.memory_space<vmem>>, %arg8: memref<16x128xf32, #tpu.memory_space<vmem>>) attributes {dimension_semantics = [], scalar_prefetch = 0 : i64, scratch_operands = 0 : i64, tpu.core_type = #tpu.core_type<tc>} {
    %c0 = arith.constant 0 : index
    %c0_0 = arith.constant 0 : index
    %0 = memref.load %arg0[%c0, %c0_0] : memref<1x1xf32, #tpu.memory_space<smem>>
    %c0_1 = arith.constant 0 : index
    %c0_2 = arith.constant 0 : index
    %1 = vector.load %arg1[%c0_1, %c0_2] : memref<16x128xf32, #tpu.memory_space<vmem>>, vector<16x128xf32>
    %c0_3 = arith.constant 0 : index
    %c0_4 = arith.constant 0 : index
    %2 = vector.load %arg2[%c0_3, %c0_4] : memref<128x256xf32, #tpu.memory_space<vmem>>, vector<128x256xf32>
    %cst = arith.constant dense<0.000000e+00> : vector<16x256xf32>
    %3 = tpu.matmul %1, %2, %cst {dimension_numbers = #tpu.dot_dimension_numbers<[1], [0], [0], [1], [0, 0, 1, 1], [], []>} : vector<16x128xf32>, vector<128x256xf32>, vector<16x256xf32> -> vector<16x256xf32>
    %4 = vector.extract_strided_slice %3 {offsets = [0, 0], sizes = [16, 192], strides = [1, 1]} : vector<16x256xf32> to vector<16x192xf32>
    %5 = arith.mulf %4, %4 : vector<16x192xf32>
    %c0_5 = arith.constant 0 : index
    %c0_6 = arith.constant 0 : index
    %6 = vector.load %arg4[%c0_5, %c0_6] : memref<192x192xf32, #tpu.memory_space<vmem>>, vector<192x192xf32>
    %cst_7 = arith.constant dense<0.000000e+00> : vector<16x192xf32>
    %7 = tpu.matmul %5, %6, %cst_7 {dimension_numbers = #tpu.dot_dimension_numbers<[1], [0], [0], [1], [0, 0, 1, 1], [], []>} : vector<16x192xf32>, vector<192x192xf32>, vector<16x192xf32> -> vector<16x192xf32>
    %cst_8 = arith.constant 1.1920929E-7 : f32
    %8 = vector.broadcast %cst_8 : f32 to vector<16x192xf32>
    %9 = arith.addf %7, %8 : vector<16x192xf32>
    %10 = math.rsqrt %9 : vector<16x192xf32>
    %11 = arith.mulf %4, %10 : vector<16x192xf32>
    %c0_9 = arith.constant 0 : index
    %c0_10 = arith.constant 0 : index
    %12 = vector.load %arg5[%c0_9, %c0_10] : memref<192x192xf32, #tpu.memory_space<vmem>>, vector<192x192xf32>
    %cst_11 = arith.constant dense<0.000000e+00> : vector<16x192xf32>
    %13 = tpu.matmul %11, %12, %cst_11 {dimension_numbers = #tpu.dot_dimension_numbers<[1], [0], [0], [1], [0, 0, 1, 1], [], []>} : vector<16x192xf32>, vector<192x192xf32>, vector<16x192xf32> -> vector<16x192xf32>
    %c0_12 = arith.constant 0 : index
    %c0_13 = arith.constant 0 : index
    %14 = vector.load %arg6[%c0_12, %c0_13] : memref<16x192xf32, #tpu.memory_space<vmem>>, vector<16x192xf32>
    %15 = arith.mulf %11, %14 : vector<16x192xf32>
    %c0_14 = arith.constant 0 : index
    %c0_15 = arith.constant 0 : index
    %16 = vector.load %arg7[%c0_14, %c0_15] : memref<16x192xf32, #tpu.memory_space<vmem>>, vector<16x192xf32>
    %17 = arith.mulf %13, %16 : vector<16x192xf32>
    %18 = arith.addf %15, %17 : vector<16x192xf32>
    %cst_16 = arith.constant 1.000000e+00 : f32
    %19 = vector.broadcast %cst_16 : f32 to vector<16x1xf32>
    %20 = vector.extract_strided_slice %3 {offsets = [0, 192], sizes = [16, 32], strides = [1, 1]} : vector<16x256xf32> to vector<16x32xf32>
    %21 = tpu.concatenate %20, %19 in 1 : vector<16x32xf32>, vector<16x1xf32> -> vector<16x33xf32>
    %22 = vector.extract_strided_slice %3 {offsets = [0, 224], sizes = [16, 32], strides = [1, 1]} : vector<16x256xf32> to vector<16x32xf32>
    %23 = tpu.concatenate %22, %19 in 1 : vector<16x32xf32>, vector<16x1xf32> -> vector<16x33xf32>
    %c0_17 = arith.constant 0 : index
    %c0_18 = arith.constant 0 : index
    %24 = vector.load %arg3[%c0_17, %c0_18] : memref<128x128xf32, #tpu.memory_space<vmem>>, vector<128x128xf32>
    %cst_19 = arith.constant 0.000000e+00 : f32
    %25 = vector.broadcast %cst_19 : f32 to vector<16x128xf32>
    %26 = vector.extract_strided_slice %18 {offsets = [0, 0], sizes = [16, 16], strides = [1, 1]} : vector<16x192xf32> to vector<16x16xf32>
    %27 = vector.extract_strided_slice %18 {offsets = [0, 16], sizes = [16, 16], strides = [1, 1]} : vector<16x192xf32> to vector<16x16xf32>
    %28 = vector.extract_strided_slice %18 {offsets = [0, 128], sizes = [16, 16], strides = [1, 1]} : vector<16x192xf32> to vector<16x16xf32>
    %29 = vector.extract_strided_slice %18 {offsets = [0, 144], sizes = [16, 16], strides = [1, 1]} : vector<16x192xf32> to vector<16x16xf32>
    %cst_20 = arith.constant dense<0.000000e+00> : vector<16x16xf32>
    %30 = tpu.matmul %26, %28, %cst_20 {dimension_numbers = #tpu.dot_dimension_numbers<[1], [1], [0], [0], [0, 0, 1, 0], [], []>} : vector<16x16xf32>, vector<16x16xf32>, vector<16x16xf32> -> vector<16x16xf32>
    %cst_21 = arith.constant dense<0xFF800000> : vector<16xf32>
    %31 = vector.multi_reduction <maximumf>, %30, %cst_21 [1] : vector<16x16xf32> to vector<16xf32>
    %32 = vector.shape_cast %31 : vector<16xf32> to vector<16x1xf32>
    %33 = vector.broadcast %32 : vector<16x1xf32> to vector<16x16xf32>
    %34 = arith.subf %30, %33 : vector<16x16xf32>
    %35 = math.exp %34 : vector<16x16xf32>
    %cst_22 = arith.constant dense<0.000000e+00> : vector<16x33xf32>
    %36 = tpu.matmul %35, %21, %cst_22 {dimension_numbers = #tpu.dot_dimension_numbers<[1], [0], [0], [1], [0, 0, 1, 1], [], []>} : vector<16x16xf32>, vector<16x33xf32>, vector<16x33xf32> -> vector<16x33xf32>
    %37 = vector.extract_strided_slice %36 {offsets = [0, 0], sizes = [16, 32], strides = [1, 1]} : vector<16x33xf32> to vector<16x32xf32>
    %38 = vector.extract_strided_slice %36 {offsets = [0, 32], sizes = [16, 1], strides = [1, 1]} : vector<16x33xf32> to vector<16x1xf32>
    %cst_23 = arith.constant 1.000000e+00 : f32
    %39 = vector.broadcast %cst_23 : f32 to vector<16x1xf32>
    %40 = arith.divf %39, %38 : vector<16x1xf32>
    %41 = vector.broadcast %40 : vector<16x1xf32> to vector<16x32xf32>
    %42 = arith.mulf %37, %41 : vector<16x32xf32>
    %cst_24 = arith.constant dense<0.000000e+00> : vector<16x16xf32>
    %43 = tpu.matmul %27, %29, %cst_24 {dimension_numbers = #tpu.dot_dimension_numbers<[1], [1], [0], [0], [0, 0, 1, 0], [], []>} : vector<16x16xf32>, vector<16x16xf32>, vector<16x16xf32> -> vector<16x16xf32>
    %cst_25 = arith.constant dense<0xFF800000> : vector<16xf32>
    %44 = vector.multi_reduction <maximumf>, %43, %cst_25 [1] : vector<16x16xf32> to vector<16xf32>
    %45 = vector.shape_cast %44 : vector<16xf32> to vector<16x1xf32>
    %46 = vector.broadcast %45 : vector<16x1xf32> to vector<16x16xf32>
    %47 = arith.subf %43, %46 : vector<16x16xf32>
    %48 = math.exp %47 : vector<16x16xf32>
    %cst_26 = arith.constant dense<0.000000e+00> : vector<16x33xf32>
    %49 = tpu.matmul %48, %21, %cst_26 {dimension_numbers = #tpu.dot_dimension_numbers<[1], [0], [0], [1], [0, 0, 1, 1], [], []>} : vector<16x16xf32>, vector<16x33xf32>, vector<16x33xf32> -> vector<16x33xf32>
    %50 = vector.extract_strided_slice %49 {offsets = [0, 0], sizes = [16, 32], strides = [1, 1]} : vector<16x33xf32> to vector<16x32xf32>
    %51 = vector.extract_strided_slice %49 {offsets = [0, 32], sizes = [16, 1], strides = [1, 1]} : vector<16x33xf32> to vector<16x1xf32>
    %cst_27 = arith.constant 1.000000e+00 : f32
    %52 = vector.broadcast %cst_27 : f32 to vector<16x1xf32>
    %53 = arith.divf %52, %51 : vector<16x1xf32>
    %54 = vector.broadcast %53 : vector<16x1xf32> to vector<16x32xf32>
    %55 = arith.mulf %50, %54 : vector<16x32xf32>
    %56 = vector.broadcast %0 : f32 to vector<16x32xf32>
    %57 = arith.mulf %56, %55 : vector<16x32xf32>
    %58 = arith.subf %42, %57 : vector<16x32xf32>
    %59 = arith.mulf %58, %58 : vector<16x32xf32>
    %cst_28 = arith.constant dense<0.000000e+00> : vector<16xf32>
    %60 = vector.multi_reduction <add>, %59, %cst_28 [1] : vector<16x32xf32> to vector<16xf32>
    %61 = vector.shape_cast %60 : vector<16xf32> to vector<16x1xf32>
    %cst_29 = arith.constant 3.200000e+01 : f32
    %62 = vector.broadcast %cst_29 : f32 to vector<16x1xf32>
    %63 = arith.divf %61, %62 : vector<16x1xf32>
    %cst_30 = arith.constant 1.1920929E-7 : f32
    %64 = vector.broadcast %cst_30 : f32 to vector<16x1xf32>
    %65 = arith.addf %63, %64 : vector<16x1xf32>
    %66 = math.rsqrt %65 : vector<16x1xf32>
    %67 = vector.broadcast %66 : vector<16x1xf32> to vector<16x32xf32>
    %68 = arith.mulf %58, %67 : vector<16x32xf32>
    %69 = vector.extract_strided_slice %24 {offsets = [0, 0], sizes = [32, 128], strides = [1, 1]} : vector<128x128xf32> to vector<32x128xf32>
    %cst_31 = arith.constant dense<0.000000e+00> : vector<16x128xf32>
    %70 = tpu.matmul %68, %69, %cst_31 {dimension_numbers = #tpu.dot_dimension_numbers<[1], [0], [0], [1], [0, 0, 1, 1], [], []>} : vector<16x32xf32>, vector<32x128xf32>, vector<16x128xf32> -> vector<16x128xf32>
    %71 = arith.addf %25, %70 : vector<16x128xf32>
    %72 = vector.extract_strided_slice %18 {offsets = [0, 32], sizes = [16, 16], strides = [1, 1]} : vector<16x192xf32> to vector<16x16xf32>
    %73 = vector.extract_strided_slice %18 {offsets = [0, 48], sizes = [16, 16], strides = [1, 1]} : vector<16x192xf32> to vector<16x16xf32>
    %74 = vector.extract_strided_slice %18 {offsets = [0, 128], sizes = [16, 16], strides = [1, 1]} : vector<16x192xf32> to vector<16x16xf32>
    %75 = vector.extract_strided_slice %18 {offsets = [0, 144], sizes = [16, 16], strides = [1, 1]} : vector<16x192xf32> to vector<16x16xf32>
    %cst_32 = arith.constant dense<0.000000e+00> : vector<16x16xf32>
    %76 = tpu.matmul %72, %74, %cst_32 {dimension_numbers = #tpu.dot_dimension_numbers<[1], [1], [0], [0], [0, 0, 1, 0], [], []>} : vector<16x16xf32>, vector<16x16xf32>, vector<16x16xf32> -> vector<16x16xf32>
    %cst_33 = arith.constant dense<0xFF800000> : vector<16xf32>
    %77 = vector.multi_reduction <maximumf>, %76, %cst_33 [1] : vector<16x16xf32> to vector<16xf32>
    %78 = vector.shape_cast %77 : vector<16xf32> to vector<16x1xf32>
    %79 = vector.broadcast %78 : vector<16x1xf32> to vector<16x16xf32>
    %80 = arith.subf %76, %79 : vector<16x16xf32>
    %81 = math.exp %80 : vector<16x16xf32>
    %cst_34 = arith.constant dense<0.000000e+00> : vector<16x33xf32>
    %82 = tpu.matmul %81, %21, %cst_34 {dimension_numbers = #tpu.dot_dimension_numbers<[1], [0], [0], [1], [0, 0, 1, 1], [], []>} : vector<16x16xf32>, vector<16x33xf32>, vector<16x33xf32> -> vector<16x33xf32>
    %83 = vector.extract_strided_slice %82 {offsets = [0, 0], sizes = [16, 32], strides = [1, 1]} : vector<16x33xf32> to vector<16x32xf32>
    %84 = vector.extract_strided_slice %82 {offsets = [0, 32], sizes = [16, 1], strides = [1, 1]} : vector<16x33xf32> to vector<16x1xf32>
    %cst_35 = arith.constant 1.000000e+00 : f32
    %85 = vector.broadcast %cst_35 : f32 to vector<16x1xf32>
    %86 = arith.divf %85, %84 : vector<16x1xf32>
    %87 = vector.broadcast %86 : vector<16x1xf32> to vector<16x32xf32>
    %88 = arith.mulf %83, %87 : vector<16x32xf32>
    %cst_36 = arith.constant dense<0.000000e+00> : vector<16x16xf32>
    %89 = tpu.matmul %73, %75, %cst_36 {dimension_numbers = #tpu.dot_dimension_numbers<[1], [1], [0], [0], [0, 0, 1, 0], [], []>} : vector<16x16xf32>, vector<16x16xf32>, vector<16x16xf32> -> vector<16x16xf32>
    %cst_37 = arith.constant dense<0xFF800000> : vector<16xf32>
    %90 = vector.multi_reduction <maximumf>, %89, %cst_37 [1] : vector<16x16xf32> to vector<16xf32>
    %91 = vector.shape_cast %90 : vector<16xf32> to vector<16x1xf32>
    %92 = vector.broadcast %91 : vector<16x1xf32> to vector<16x16xf32>
    %93 = arith.subf %89, %92 : vector<16x16xf32>
    %94 = math.exp %93 : vector<16x16xf32>
    %cst_38 = arith.constant dense<0.000000e+00> : vector<16x33xf32>
    %95 = tpu.matmul %94, %21, %cst_38 {dimension_numbers = #tpu.dot_dimension_numbers<[1], [0], [0], [1], [0, 0, 1, 1], [], []>} : vector<16x16xf32>, vector<16x33xf32>, vector<16x33xf32> -> vector<16x33xf32>
    %96 = vector.extract_strided_slice %95 {offsets = [0, 0], sizes = [16, 32], strides = [1, 1]} : vector<16x33xf32> to vector<16x32xf32>
    %97 = vector.extract_strided_slice %95 {offsets = [0, 32], sizes = [16, 1], strides = [1, 1]} : vector<16x33xf32> to vector<16x1xf32>
    %cst_39 = arith.constant 1.000000e+00 : f32
    %98 = vector.broadcast %cst_39 : f32 to vector<16x1xf32>
    %99 = arith.divf %98, %97 : vector<16x1xf32>
    %100 = vector.broadcast %99 : vector<16x1xf32> to vector<16x32xf32>
    %101 = arith.mulf %96, %100 : vector<16x32xf32>
    %102 = vector.broadcast %0 : f32 to vector<16x32xf32>
    %103 = arith.mulf %102, %101 : vector<16x32xf32>
    %104 = arith.subf %88, %103 : vector<16x32xf32>
    %105 = arith.mulf %104, %104 : vector<16x32xf32>
    %cst_40 = arith.constant dense<0.000000e+00> : vector<16xf32>
    %106 = vector.multi_reduction <add>, %105, %cst_40 [1] : vector<16x32xf32> to vector<16xf32>
    %107 = vector.shape_cast %106 : vector<16xf32> to vector<16x1xf32>
    %cst_41 = arith.constant 3.200000e+01 : f32
    %108 = vector.broadcast %cst_41 : f32 to vector<16x1xf32>
    %109 = arith.divf %107, %108 : vector<16x1xf32>
    %cst_42 = arith.constant 1.1920929E-7 : f32
    %110 = vector.broadcast %cst_42 : f32 to vector<16x1xf32>
    %111 = arith.addf %109, %110 : vector<16x1xf32>
    %112 = math.rsqrt %111 : vector<16x1xf32>
    %113 = vector.broadcast %112 : vector<16x1xf32> to vector<16x32xf32>
    %114 = arith.mulf %104, %113 : vector<16x32xf32>
    %115 = vector.extract_strided_slice %24 {offsets = [32, 0], sizes = [32, 128], strides = [1, 1]} : vector<128x128xf32> to vector<32x128xf32>
    %cst_43 = arith.constant dense<0.000000e+00> : vector<16x128xf32>
    %116 = tpu.matmul %114, %115, %cst_43 {dimension_numbers = #tpu.dot_dimension_numbers<[1], [0], [0], [1], [0, 0, 1, 1], [], []>} : vector<16x32xf32>, vector<32x128xf32>, vector<16x128xf32> -> vector<16x128xf32>
    %117 = arith.addf %71, %116 : vector<16x128xf32>
    %118 = vector.extract_strided_slice %18 {offsets = [0, 64], sizes = [16, 16], strides = [1, 1]} : vector<16x192xf32> to vector<16x16xf32>
    %119 = vector.extract_strided_slice %18 {offsets = [0, 80], sizes = [16, 16], strides = [1, 1]} : vector<16x192xf32> to vector<16x16xf32>
    %120 = vector.extract_strided_slice %18 {offsets = [0, 160], sizes = [16, 16], strides = [1, 1]} : vector<16x192xf32> to vector<16x16xf32>
    %121 = vector.extract_strided_slice %18 {offsets = [0, 176], sizes = [16, 16], strides = [1, 1]} : vector<16x192xf32> to vector<16x16xf32>
    %cst_44 = arith.constant dense<0.000000e+00> : vector<16x16xf32>
    %122 = tpu.matmul %118, %120, %cst_44 {dimension_numbers = #tpu.dot_dimension_numbers<[1], [1], [0], [0], [0, 0, 1, 0], [], []>} : vector<16x16xf32>, vector<16x16xf32>, vector<16x16xf32> -> vector<16x16xf32>
    %cst_45 = arith.constant dense<0xFF800000> : vector<16xf32>
    %123 = vector.multi_reduction <maximumf>, %122, %cst_45 [1] : vector<16x16xf32> to vector<16xf32>
    %124 = vector.shape_cast %123 : vector<16xf32> to vector<16x1xf32>
    %125 = vector.broadcast %124 : vector<16x1xf32> to vector<16x16xf32>
    %126 = arith.subf %122, %125 : vector<16x16xf32>
    %127 = math.exp %126 : vector<16x16xf32>
    %cst_46 = arith.constant dense<0.000000e+00> : vector<16x33xf32>
    %128 = tpu.matmul %127, %23, %cst_46 {dimension_numbers = #tpu.dot_dimension_numbers<[1], [0], [0], [1], [0, 0, 1, 1], [], []>} : vector<16x16xf32>, vector<16x33xf32>, vector<16x33xf32> -> vector<16x33xf32>
    %129 = vector.extract_strided_slice %128 {offsets = [0, 0], sizes = [16, 32], strides = [1, 1]} : vector<16x33xf32> to vector<16x32xf32>
    %130 = vector.extract_strided_slice %128 {offsets = [0, 32], sizes = [16, 1], strides = [1, 1]} : vector<16x33xf32> to vector<16x1xf32>
    %cst_47 = arith.constant 1.000000e+00 : f32
    %131 = vector.broadcast %cst_47 : f32 to vector<16x1xf32>
    %132 = arith.divf %131, %130 : vector<16x1xf32>
    %133 = vector.broadcast %132 : vector<16x1xf32> to vector<16x32xf32>
    %134 = arith.mulf %129, %133 : vector<16x32xf32>
    %cst_48 = arith.constant dense<0.000000e+00> : vector<16x16xf32>
    %135 = tpu.matmul %119, %121, %cst_48 {dimension_numbers = #tpu.dot_dimension_numbers<[1], [1], [0], [0], [0, 0, 1, 0], [], []>} : vector<16x16xf32>, vector<16x16xf32>, vector<16x16xf32> -> vector<16x16xf32>
    %cst_49 = arith.constant dense<0xFF800000> : vector<16xf32>
    %136 = vector.multi_reduction <maximumf>, %135, %cst_49 [1] : vector<16x16xf32> to vector<16xf32>
    %137 = vector.shape_cast %136 : vector<16xf32> to vector<16x1xf32>
    %138 = vector.broadcast %137 : vector<16x1xf32> to vector<16x16xf32>
    %139 = arith.subf %135, %138 : vector<16x16xf32>
    %140 = math.exp %139 : vector<16x16xf32>
    %cst_50 = arith.constant dense<0.000000e+00> : vector<16x33xf32>
    %141 = tpu.matmul %140, %23, %cst_50 {dimension_numbers = #tpu.dot_dimension_numbers<[1], [0], [0], [1], [0, 0, 1, 1], [], []>} : vector<16x16xf32>, vector<16x33xf32>, vector<16x33xf32> -> vector<16x33xf32>
    %142 = vector.extract_strided_slice %141 {offsets = [0, 0], sizes = [16, 32], strides = [1, 1]} : vector<16x33xf32> to vector<16x32xf32>
    %143 = vector.extract_strided_slice %141 {offsets = [0, 32], sizes = [16, 1], strides = [1, 1]} : vector<16x33xf32> to vector<16x1xf32>
    %cst_51 = arith.constant 1.000000e+00 : f32
    %144 = vector.broadcast %cst_51 : f32 to vector<16x1xf32>
    %145 = arith.divf %144, %143 : vector<16x1xf32>
    %146 = vector.broadcast %145 : vector<16x1xf32> to vector<16x32xf32>
    %147 = arith.mulf %142, %146 : vector<16x32xf32>
    %148 = vector.broadcast %0 : f32 to vector<16x32xf32>
    %149 = arith.mulf %148, %147 : vector<16x32xf32>
    %150 = arith.subf %134, %149 : vector<16x32xf32>
    %151 = arith.mulf %150, %150 : vector<16x32xf32>
    %cst_52 = arith.constant dense<0.000000e+00> : vector<16xf32>
    %152 = vector.multi_reduction <add>, %151, %cst_52 [1] : vector<16x32xf32> to vector<16xf32>
    %153 = vector.shape_cast %152 : vector<16xf32> to vector<16x1xf32>
    %cst_53 = arith.constant 3.200000e+01 : f32
    %154 = vector.broadcast %cst_53 : f32 to vector<16x1xf32>
    %155 = arith.divf %153, %154 : vector<16x1xf32>
    %cst_54 = arith.constant 1.1920929E-7 : f32
    %156 = vector.broadcast %cst_54 : f32 to vector<16x1xf32>
    %157 = arith.addf %155, %156 : vector<16x1xf32>
    %158 = math.rsqrt %157 : vector<16x1xf32>
    %159 = vector.broadcast %158 : vector<16x1xf32> to vector<16x32xf32>
    %160 = arith.mulf %150, %159 : vector<16x32xf32>
    %161 = vector.extract_strided_slice %24 {offsets = [64, 0], sizes = [32, 128], strides = [1, 1]} : vector<128x128xf32> to vector<32x128xf32>
    %cst_55 = arith.constant dense<0.000000e+00> : vector<16x128xf32>
    %162 = tpu.matmul %160, %161, %cst_55 {dimension_numbers = #tpu.dot_dimension_numbers<[1], [0], [0], [1], [0, 0, 1, 1], [], []>} : vector<16x32xf32>, vector<32x128xf32>, vector<16x128xf32> -> vector<16x128xf32>
    %163 = arith.addf %117, %162 : vector<16x128xf32>
    %164 = vector.extract_strided_slice %18 {offsets = [0, 96], sizes = [16, 16], strides = [1, 1]} : vector<16x192xf32> to vector<16x16xf32>
    %165 = vector.extract_strided_slice %18 {offsets = [0, 112], sizes = [16, 16], strides = [1, 1]} : vector<16x192xf32> to vector<16x16xf32>
    %166 = vector.extract_strided_slice %18 {offsets = [0, 160], sizes = [16, 16], strides = [1, 1]} : vector<16x192xf32> to vector<16x16xf32>
    %167 = vector.extract_strided_slice %18 {offsets = [0, 176], sizes = [16, 16], strides = [1, 1]} : vector<16x192xf32> to vector<16x16xf32>
    %cst_56 = arith.constant dense<0.000000e+00> : vector<16x16xf32>
    %168 = tpu.matmul %164, %166, %cst_56 {dimension_numbers = #tpu.dot_dimension_numbers<[1], [1], [0], [0], [0, 0, 1, 0], [], []>} : vector<16x16xf32>, vector<16x16xf32>, vector<16x16xf32> -> vector<16x16xf32>
    %cst_57 = arith.constant dense<0xFF800000> : vector<16xf32>
    %169 = vector.multi_reduction <maximumf>, %168, %cst_57 [1] : vector<16x16xf32> to vector<16xf32>
    %170 = vector.shape_cast %169 : vector<16xf32> to vector<16x1xf32>
    %171 = vector.broadcast %170 : vector<16x1xf32> to vector<16x16xf32>
    %172 = arith.subf %168, %171 : vector<16x16xf32>
    %173 = math.exp %172 : vector<16x16xf32>
    %cst_58 = arith.constant dense<0.000000e+00> : vector<16x33xf32>
    %174 = tpu.matmul %173, %23, %cst_58 {dimension_numbers = #tpu.dot_dimension_numbers<[1], [0], [0], [1], [0, 0, 1, 1], [], []>} : vector<16x16xf32>, vector<16x33xf32>, vector<16x33xf32> -> vector<16x33xf32>
    %175 = vector.extract_strided_slice %174 {offsets = [0, 0], sizes = [16, 32], strides = [1, 1]} : vector<16x33xf32> to vector<16x32xf32>
    %176 = vector.extract_strided_slice %174 {offsets = [0, 32], sizes = [16, 1], strides = [1, 1]} : vector<16x33xf32> to vector<16x1xf32>
    %cst_59 = arith.constant 1.000000e+00 : f32
    %177 = vector.broadcast %cst_59 : f32 to vector<16x1xf32>
    %178 = arith.divf %177, %176 : vector<16x1xf32>
    %179 = vector.broadcast %178 : vector<16x1xf32> to vector<16x32xf32>
    %180 = arith.mulf %175, %179 : vector<16x32xf32>
    %cst_60 = arith.constant dense<0.000000e+00> : vector<16x16xf32>
    %181 = tpu.matmul %165, %167, %cst_60 {dimension_numbers = #tpu.dot_dimension_numbers<[1], [1], [0], [0], [0, 0, 1, 0], [], []>} : vector<16x16xf32>, vector<16x16xf32>, vector<16x16xf32> -> vector<16x16xf32>
    %cst_61 = arith.constant dense<0xFF800000> : vector<16xf32>
    %182 = vector.multi_reduction <maximumf>, %181, %cst_61 [1] : vector<16x16xf32> to vector<16xf32>
    %183 = vector.shape_cast %182 : vector<16xf32> to vector<16x1xf32>
    %184 = vector.broadcast %183 : vector<16x1xf32> to vector<16x16xf32>
    %185 = arith.subf %181, %184 : vector<16x16xf32>
    %186 = math.exp %185 : vector<16x16xf32>
    %cst_62 = arith.constant dense<0.000000e+00> : vector<16x33xf32>
    %187 = tpu.matmul %186, %23, %cst_62 {dimension_numbers = #tpu.dot_dimension_numbers<[1], [0], [0], [1], [0, 0, 1, 1], [], []>} : vector<16x16xf32>, vector<16x33xf32>, vector<16x33xf32> -> vector<16x33xf32>
    %188 = vector.extract_strided_slice %187 {offsets = [0, 0], sizes = [16, 32], strides = [1, 1]} : vector<16x33xf32> to vector<16x32xf32>
    %189 = vector.extract_strided_slice %187 {offsets = [0, 32], sizes = [16, 1], strides = [1, 1]} : vector<16x33xf32> to vector<16x1xf32>
    %cst_63 = arith.constant 1.000000e+00 : f32
    %190 = vector.broadcast %cst_63 : f32 to vector<16x1xf32>
    %191 = arith.divf %190, %189 : vector<16x1xf32>
    %192 = vector.broadcast %191 : vector<16x1xf32> to vector<16x32xf32>
    %193 = arith.mulf %188, %192 : vector<16x32xf32>
    %194 = vector.broadcast %0 : f32 to vector<16x32xf32>
    %195 = arith.mulf %194, %193 : vector<16x32xf32>
    %196 = arith.subf %180, %195 : vector<16x32xf32>
    %197 = arith.mulf %196, %196 : vector<16x32xf32>
    %cst_64 = arith.constant dense<0.000000e+00> : vector<16xf32>
    %198 = vector.multi_reduction <add>, %197, %cst_64 [1] : vector<16x32xf32> to vector<16xf32>
    %199 = vector.shape_cast %198 : vector<16xf32> to vector<16x1xf32>
    %cst_65 = arith.constant 3.200000e+01 : f32
    %200 = vector.broadcast %cst_65 : f32 to vector<16x1xf32>
    %201 = arith.divf %199, %200 : vector<16x1xf32>
    %cst_66 = arith.constant 1.1920929E-7 : f32
    %202 = vector.broadcast %cst_66 : f32 to vector<16x1xf32>
    %203 = arith.addf %201, %202 : vector<16x1xf32>
    %204 = math.rsqrt %203 : vector<16x1xf32>
    %205 = vector.broadcast %204 : vector<16x1xf32> to vector<16x32xf32>
    %206 = arith.mulf %196, %205 : vector<16x32xf32>
    %207 = vector.extract_strided_slice %24 {offsets = [96, 0], sizes = [32, 128], strides = [1, 1]} : vector<128x128xf32> to vector<32x128xf32>
    %cst_67 = arith.constant dense<0.000000e+00> : vector<16x128xf32>
    %208 = tpu.matmul %206, %207, %cst_67 {dimension_numbers = #tpu.dot_dimension_numbers<[1], [0], [0], [1], [0, 0, 1, 1], [], []>} : vector<16x32xf32>, vector<32x128xf32>, vector<16x128xf32> -> vector<16x128xf32>
    %209 = arith.addf %163, %208 : vector<16x128xf32>
    %c0_68 = arith.constant 0 : index
    %c0_69 = arith.constant 0 : index
    %210 = vector.load %arg8[%c0_68, %c0_69] : memref<16x128xf32, #tpu.memory_space<vmem>>, vector<16x128xf32>
    tpu.vector_store %arg8[%c0_68, %c0_69], %209 {strides = array<i32>} : memref<16x128xf32, #tpu.memory_space<vmem>>, vector<16x128xf32>,
    return
  }
}

</mosaic_0001>

<bundles_post_ra>
// kernel: tpu_custom_call.1
= control target key start
LH: loop header
LB: loop body
LE: loop exit
PB: predicated region body
PF: predicated region fallthrough
CT: control target
= control target key end

     0   :  { %14 = vsyncpa [#allocation4], 0  ;;  %s3942_s0 = inlined_call_operand.<no memory space> [shape: f32[1,1], index: 0, kind: input, shape index: {}]   ;;  %s3943_s1 = inlined_call_operand.hbm [shape: f32[16,128], index: 1, kind: input, shape index: {}]   ;;  %s3944_s2 = inlined_call_operand.hbm [shape: f32[128,256], index: 2, kind: input, shape index: {}]   ;;  %s3945_s3 = inlined_call_operand.hbm [shape: f32[128,128], index: 3, kind: input, shape index: {}]   ;;  %s3946_s4 = inlined_call_operand.hbm [shape: f32[192,192], index: 4, kind: input, shape index: {}]   ;;  %s3947_s5 = inlined_call_operand.hbm [shape: f32[192,192], index: 5, kind: input, shape index: {}]   ;;  %s3948_s6 = inlined_call_operand.hbm [shape: f32[16,192], index: 6, kind: input, shape index: {}]   ;;  %s3949_s7 = inlined_call_operand.hbm [shape: f32[16,192], index: 7, kind: input, shape index: {}]   ;;  %s3950_s8 = inlined_call_operand.hbm [shape: f32[16,128], index: 8, kind: output, shape index: {}]  }
   0x1   :  { %15 = vsyncpa [#allocation7], 0 }
   0x2   :  { %16 = vsyncpa [#allocation10], 0 }
   0x3   :  { %17 = vsyncpa [#allocation13], 0 }
   0x4   :  { %18 = vsyncpa [#allocation5], 0  ;;  %s3436_s27 = smov [#allocation6]   ;;  %s3250_s9 = scalar_lea.hbm %s3944_s2, 4096 }
   0x5   :  { %s38_s28 = sshll.u32 %s3436_s27, 4  ;;  %p3251_p0 = scmp.ne.s32.totalorder %s3944_s2, %s3250_s9  ;;  %s39_s28 = int_to_ptr.vmem [resolvable:$true] %s38_s28 }
   0x6   :  { %p3254_p1 = scmp.lt.u32.totalorder %s3250_s9, %s3944_s2 }
   0x8   :  { %p3256_p2 = pnand %p3254_p1, %p3251_p0 }
   0xa   :  { %3259 = shalt.err (!%p3256_p2)
}
   0xb   :  { %s3260_s14 = scalar_lea.vmem %s39_s28, 4096  ;;  %p3265_p4 = scmp.lt.s32.totalorder %s39_s28, %s39_s28 }
   0xc   :  { %p3261_p3 = scmp.ne.s32.totalorder %s39_s28, %s3260_s14  ;;  %p3266_p5 = scmp.lt.s32.totalorder %s3260_s14, %s3260_s14 }
   0xe   :  { %p3267_p6 = por %p3266_p5, %p3265_p4 }
  0x10   :  { %p3268_p7 = pnand %p3267_p6, %p3261_p3 }
  0x12   :  { %3271 = shalt.err (!%p3268_p7)
}
  0x13   :  { %s3437_s15 = smov 256   ;;  %s3438_s16 = smov 16  }
  0x14   :  { %44 = dma.hbm_to_vmem [thread:$0]  %s3944_s2, 4096, %s39_s28, [#allocation7], %s3437_s15, %s3437_s15, %s3438_s16  }
  0x15   :  { %s3439_s19 = smov [#allocation9]   ;;  %s3440_s21 = smov [#allocation12]  }
  0x16   :  { %s62_s20 = sshll.u32 %s3439_s19, 4  ;;  %s86_s22 = sshll.u32 %s3440_s21, 4  ;;  %s63_s20 = int_to_ptr.vmem [resolvable:$true] %s62_s20  ;;  %s87_s22 = int_to_ptr.vmem [resolvable:$true] %s86_s22 }
  0x17   :  { %s3272_s25 = scalar_lea.hbm %s3946_s4, 6144 }
  0x18   :  { %p3273_p8 = scmp.ne.s32.totalorder %s3946_s4, %s3272_s25  ;;  %p3276_p9 = scmp.lt.u32.totalorder %s3272_s25, %s3946_s4 }
  0x1a   :  { %p3278_p10 = pnand %p3276_p9, %p3273_p8 }
  0x1c   :  { %3281 = shalt.err (!%p3278_p10)
}
  0x1d   :  { %s3282_s2 = scalar_lea.vmem %s63_s20, 6144  ;;  %p3287_p12 = scmp.lt.s32.totalorder %s63_s20, %s63_s20 }
  0x1e   :  { %p3283_p11 = scmp.ne.s32.totalorder %s63_s20, %s3282_s2  ;;  %p3288_p13 = scmp.lt.s32.totalorder %s3282_s2, %s3282_s2 }
  0x20   :  { %p3289_p0 = por %p3288_p13, %p3287_p12 }
  0x22   :  { %p3290_p1 = pnand %p3289_p0, %p3283_p11 }
  0x24   :  { %3293 = shalt.err (!%p3290_p1)
}
  0x25   :  { %68 = dma.hbm_to_vmem [thread:$0]  %s3946_s4, 6144, %s63_s20, [#allocation10], %s3437_s15, %s3437_s15, %s3438_s16  }
  0x26   :  { %s3294_s12 = scalar_lea.hbm %s3948_s6, 512 }
  0x27   :  { %p3295_p2 = scmp.ne.s32.totalorder %s3948_s6, %s3294_s12  ;;  %p3298_p3 = scmp.lt.u32.totalorder %s3294_s12, %s3948_s6 }
  0x29   :  { %p3300_p4 = pnand %p3298_p3, %p3295_p2 }
  0x2b   :  { %3303 = shalt.err (!%p3300_p4)
}
  0x2c   :  { %s3304_s19 = scalar_lea.vmem %s87_s22, 512  ;;  %p3309_p6 = scmp.lt.s32.totalorder %s87_s22, %s87_s22 }
  0x2d   :  { %p3305_p5 = scmp.ne.s32.totalorder %s87_s22, %s3304_s19  ;;  %p3310_p7 = scmp.lt.s32.totalorder %s3304_s19, %s3304_s19 }
  0x2f   :  { %p3311_p8 = por %p3310_p7, %p3309_p6 }
  0x31   :  { %p3312_p9 = pnand %p3311_p8, %p3305_p5 }
  0x33   :  { %3315 = shalt.err (!%p3312_p9)
}
  0x34   :  { %92 = dma.hbm_to_vmem [thread:$0]  %s3948_s6, 512, %s87_s22, [#allocation13], %s3437_s15, %s3437_s15, %s3438_s16  }
  0x35   :  { %s3441_s21 = smov [#allocation3]   ;;  %s3316_s26 = scalar_lea.hbm %s3943_s1, 256 }
  0x36   :  { %s26_s23 = sshll.u32 %s3441_s21, 4  ;;  %p3317_p10 = scmp.ne.s32.totalorder %s3943_s1, %s3316_s26  ;;  %s27_s23 = int_to_ptr.vmem [resolvable:$true] %s26_s23 }
  0x37   :  { %p3320_p11 = scmp.lt.u32.totalorder %s3316_s26, %s3943_s1 }
  0x39   :  { %p3322_p12 = pnand %p3320_p11, %p3317_p10 }
  0x3b   :  { %3325 = shalt.err (!%p3322_p12)
}
  0x3c   :  { %s3326_s28 = scalar_lea.vmem %s27_s23, 256  ;;  %p3331_p0 = scmp.lt.s32.totalorder %s27_s23, %s27_s23 }
  0x3d   :  { %p3327_p13 = scmp.ne.s32.totalorder %s27_s23, %s3326_s28  ;;  %p3332_p1 = scmp.lt.s32.totalorder %s3326_s28, %s3326_s28 }
  0x3f   :  { %p3333_p2 = por %p3332_p1, %p3331_p0 }
  0x41   :  { %p3334_p3 = pnand %p3333_p2, %p3327_p13 }
  0x43   :  { %3337 = shalt.err (!%p3334_p3)
}
  0x44   :  { %s3442_s6 = smov 128   ;;  %s3443_s22 = smov 8  }
  0x45   :  { %32 = dma.hbm_to_vmem [thread:$0]  %s3943_s1, 256, %s27_s23, [#allocation4], %s3442_s6, %s3442_s6, %s3443_s22  }
  0x46   :  { %s3444_s11 = smov [#allocation8]   ;;  %s3445_s13 = smov [#allocation11]  }
  0x47   :  { %s50_s12 = sshll.u32 %s3444_s11, 4  ;;  %s74_s14 = sshll.u32 %s3445_s13, 4  ;;  %s51_s12 = int_to_ptr.vmem [resolvable:$true] %s50_s12  ;;  %s3561_s14 = int_to_ptr.vmem [resolvable:$true] %s74_s14 }
  0x48   :  { %s3338_s19 = scalar_lea.hbm %s3945_s3, 2048 }
  0x49   :  { %p3339_p4 = scmp.ne.s32.totalorder %s3945_s3, %s3338_s19  ;;  %p3342_p5 = scmp.lt.u32.totalorder %s3338_s19, %s3945_s3 }
  0x4b   :  { %p3344_p6 = pnand %p3342_p5, %p3339_p4 }
  0x4d   :  { %3347 = shalt.err (!%p3344_p6)
}
  0x4e   :  { %s3348_s1 = scalar_lea.vmem %s51_s12, 2048  ;;  %p3353_p8 = scmp.lt.s32.totalorder %s51_s12, %s51_s12 }
  0x4f   :  { %p3349_p7 = scmp.ne.s32.totalorder %s51_s12, %s3348_s1  ;;  %p3354_p9 = scmp.lt.s32.totalorder %s3348_s1, %s3348_s1 }
  0x51   :  { %p3355_p10 = por %p3354_p9, %p3353_p8 }
  0x53   :  { %p3356_p11 = pnand %p3355_p10, %p3349_p7 }
  0x55   :  { %3359 = shalt.err (!%p3356_p11)
}
  0x56   :  { %56 = dma.hbm_to_vmem [thread:$0]  %s3945_s3, 2048, %s51_s12, [#allocation7], %s3442_s6, %s3442_s6, %s3443_s22  }
  0x57   :  { %s3360_s29 = scalar_lea.hbm %s3947_s5, 6144 }
  0x58   :  { %p3361_p12 = scmp.ne.s32.totalorder %s3947_s5, %s3360_s29  ;;  %p3364_p13 = scmp.lt.u32.totalorder %s3360_s29, %s3947_s5 }
  0x5a   :  { %p3366_p0 = pnand %p3364_p13, %p3361_p12 }
  0x5c   :  { %3369 = shalt.err (!%p3366_p0)
}
  0x5d   :  { %s3370_s10 = scalar_lea.vmem %s3561_s14, 6144  ;;  %p3375_p2 = scmp.lt.s32.totalorder %s3561_s14, %s3561_s14 }
  0x5e   :  { %p3371_p1 = scmp.ne.s32.totalorder %s3561_s14, %s3370_s10  ;;  %p3376_p3 = scmp.lt.s32.totalorder %s3370_s10, %s3370_s10 }
  0x60   :  { %p3377_p4 = por %p3376_p3, %p3375_p2 }
  0x62   :  { %p3378_p5 = pnand %p3377_p4, %p3371_p1 }
  0x64   :  { %3381 = shalt.err (!%p3378_p5)
}
  0x65   :  { %80 = dma.hbm_to_vmem [thread:$0]  %s3947_s5, 6144, %s3561_s14, [#allocation10], %s3437_s15, %s3437_s15, %s3438_s16  }
  0x66   :  { %s3446_s12 = smov [#allocation14]   ;;  %s3382_s19 = scalar_lea.hbm %s3949_s7, 512 }
  0x67   :  { %s98_s13 = sshll.u32 %s3446_s12, 4  ;;  %p3383_p6 = scmp.ne.s32.totalorder %s3949_s7, %s3382_s19  ;;  %s99_s13 = int_to_ptr.vmem [resolvable:$true] %s98_s13 }
  0x68   :  { %p3386_p7 = scmp.lt.u32.totalorder %s3382_s19, %s3949_s7 }
  0x6a   :  { %p3388_p8 = pnand %p3386_p7, %p3383_p6 }
  0x6c   :  { %3391 = shalt.err (!%p3388_p8)
}
  0x6d   :  { %s3392_s1 = scalar_lea.vmem %s99_s13, 512  ;;  %p3397_p10 = scmp.lt.s32.totalorder %s99_s13, %s99_s13 }
  0x6e   :  { %p3393_p9 = scmp.ne.s32.totalorder %s99_s13, %s3392_s1  ;;  %p3398_p11 = scmp.lt.s32.totalorder %s3392_s1, %s3392_s1 }
  0x70   :  { %p3399_p12 = por %p3398_p11, %p3397_p10 }
  0x72   :  { %p3400_p13 = pnand %p3399_p12, %p3393_p9 }
  0x74   :  { %3403 = shalt.err (!%p3400_p13)
}
  0x75   :  { %104 = dma.hbm_to_vmem [thread:$0]  %s3949_s7, 512, %s99_s13, [#allocation13], %s3437_s15, %s3437_s15, %s3438_s16  }
  0x76   :  { %3426 = dma.done.wait [#allocation4], 256  }
  0x77   :  { %3427 = vsyncadd [#allocation4], 4294967040 }
  0x78   :  { %3428 = dma.done.wait [#allocation7], 6144  }
  0x79   :  { %3429 = vsyncadd [#allocation7], 4294961152 }
  0x7a   :  { %3430 = dma.done.wait [#allocation10], 12288  }
  0x7b   :  { %3431 = vsyncadd [#allocation10], 4294955008 }
  0x7c   :  { %3432 = dma.done.wait [#allocation13], 1024  }
  0x7d   :  { %3433 = vsyncadd [#allocation13], 4294966272  ;;  %v3447_v0 = vmov 0.0   ;;  %v130_v1 = vld [vmem:[#allocation6 + $0x8] sm:$0xff]  ;;  %v132_v2 = vld [vmem:[#allocation6 + $0x18] sm:$0xff]  ;;  %vm290_vm0 = vcmask 523264  }
  0x7e   :  { %225 = vmatprep.mubr.f32.mxu0 %v3447_v0  ;;  %v129_v3 = vld [vmem:[#allocation6] sm:$0xff]  ;;  %v2869_v4 = vpack.c.bf16 %v132_v2, %v130_v1  ;;  %v131_v5 = vld [vmem:[#allocation6 + $0x10] sm:$0xff]  ;;  %v134_v6 = vld [vmem:[#allocation6 + $0x28] sm:$0xff]  ;;  %s3448_s7 = smov 64   ;;  %vm568_vm1 = vcmask 130048   ;;  %vm541_vm2 = vcmask 261120  }
  0x7f   :  { %v136_v7 = vld [vmem:[#allocation6 + $0x38] sm:$0xff]  ;;  %v2871_v8 = vpack.c.bf16 %v131_v5, %v129_v3  ;;  %v133_v10 = vld [vmem:[#allocation6 + $0x20] sm:$0xff]  ;;  %v135_v11 = vld [vmem:[#allocation6 + $0x30] sm:$0xff]  ;;  %s3449_s15 = smov 112   ;;  %s3450_s23 = smov 96  }
  0x80   :  { %v2873_v9 = vpack.c.bf16 %v136_v7, %v134_v6  ;;  %v138_v12 = vld [vmem:[#allocation6 + $0x48] sm:$0xff]  ;;  %2870 = vmatprep.subr.bf16.mxu0 %v2869_v4  ;;  %v140_v13 = vld [vmem:[#allocation6 + $0x58] sm:$0xff]  ;;  %v2875_v14 = vpack.c.bf16 %v135_v11, %v133_v10  ;;  %v137_v16 = vld [vmem:[#allocation6 + $0x40] sm:$0xff]  ;;  %s3451_s25 = smov 80   ;;  %s3452_s26 = smov 48  }
  0x81   :  { %2872 = vmatpush1.bf16.msra.mxu0 %v2871_v8  ;;  %v2877_v15 = vpack.c.bf16 %v140_v13, %v138_v12  ;;  %v139_v17 = vld [vmem:[#allocation6 + $0x50] sm:$0xff]  ;;  %v142_v18 = vld [vmem:[#allocation6 + $0x68] sm:$0xff]  ;;  %v144_v19 = vld [vmem:[#allocation6 + $0x78] sm:$0xff]  ;;  %s3453_s27 = smov 32  }
  0x82   :  { %2874 = vmatprep.subr.bf16.mxu0 %v2873_v9  ;;  %v2879_v20 = vpack.c.bf16 %v139_v17, %v137_v16  ;;  %v2881_v21 = vpack.c.bf16 %v144_v19, %v142_v18  ;;  %v141_v22 = vld [vmem:[#allocation6 + $0x60] sm:$0xff]  ;;  %v143_v23 = vld [vmem:[#allocation6 + $0x70] sm:$0xff]  ;;  %v146_v24 = vld [vmem:[#allocation6 + $0x88] sm:$0xff] }
  0x83   :  { %v148_v25 = vld [vmem:[#allocation6 + $0x98] sm:$0xff]  ;;  %v145_v26 = vld [vmem:[#allocation6 + $0x80] sm:$0xff]  ;;  %v147_v27 = vld [vmem:[#allocation6 + $0x90] sm:$0xff]  ;;  %v2883_v30 = vpack.c.bf16 %v143_v23, %v141_v22 }
  0x84   :  { %v243_v28 = vld [vmem:[#allocation9 + $0x8] sm:$0xff]  ;;  %v245_v29 = vld [vmem:[#allocation9 + $0x18] sm:$0xff]  ;;  %v242_v33 = vld [vmem:[#allocation9] sm:$0xff]  ;;  %v2885_v36 = vpack.c.bf16 %v148_v25, %v146_v24  ;;  %v2887_v46 = vpack.c.bf16 %v147_v27, %v145_v26 }
  0x85   :  { %2876 = vmatpush1.bf16.msra.mxu0 %v2875_v14  ;;  %v150_v31 = vld [vmem:[#allocation6 + $0xa8] sm:$0xff]  ;;  %v2901_v32 = vpack.c.bf16 %v245_v29, %v243_v28  ;;  %v244_v34 = vld [vmem:[#allocation9 + $0x10] sm:$0xff]  ;;  %v249_v38 = vld [vmem:[#allocation9 + $0x38] sm:$0xff] }
  0x86   :  { %2878 = vmatprep.subr.bf16.mxu0 %v2877_v15  ;;  %v247_v35 = vld [vmem:[#allocation9 + $0x28] sm:$0xff]  ;;  %v2903_v37 = vpack.c.bf16 %v244_v34, %v242_v33  ;;  %v246_v39 = vld [vmem:[#allocation9 + $0x20] sm:$0xff]  ;;  %v248_v40 = vld [vmem:[#allocation9 + $0x30] sm:$0xff] }
  0x87   :  { %v152_v41 = vld [vmem:[#allocation6 + $0xb8] sm:$0xff]  ;;  %2902 = vmatprep.subr.bf16.mxu1 %v2901_v32  ;;  %v2905_v42 = vpack.c.bf16 %v249_v38, %v247_v35  ;;  %v251_v43 = vld [vmem:[#allocation9 + $0x48] sm:$0xff]  ;;  %v2907_v45 = vpack.c.bf16 %v248_v40, %v246_v39  ;;  %v149_v47 = vld [vmem:[#allocation6 + $0xa0] sm:$0xff] }
  0x88   :  { %v253_v44 = vld [vmem:[#allocation9 + $0x58] sm:$0xff]  ;;  %2904 = vmatpush1.bf16.msra.mxu1 %v2903_v37  ;;  %v250_v49 = vld [vmem:[#allocation9 + $0x40] sm:$0xff]  ;;  %v252_v50 = vld [vmem:[#allocation9 + $0x50] sm:$0xff]  ;;  %v2889_v51 = vpack.c.bf16 %v152_v41, %v150_v31 }
  0x89   :  { %2880 = vmatpush1.bf16.msra.mxu0 %v2879_v20  ;;  %2906 = vmatprep.subr.bf16.mxu1 %v2905_v42  ;;  %v2909_v48 = vpack.c.bf16 %v253_v44, %v251_v43  ;;  %v151_v52 = vld [vmem:[#allocation6 + $0xb0] sm:$0xff]  ;;  %v255_v53 = vld [vmem:[#allocation9 + $0x68] sm:$0xff]  ;;  %v257_v54 = vld [vmem:[#allocation9 + $0x78] sm:$0xff]  ;;  %v2911_v57 = vpack.c.bf16 %v252_v50, %v250_v49 }
  0x8a   :  { %2882 = vmatprep.subr.bf16.mxu0 %v2881_v21  ;;  %v154_v55 = vld [vmem:[#allocation6 + $0xc8] sm:$0xff]  ;;  %v156_v56 = vld [vmem:[#allocation6 + $0xd8] sm:$0xff]  ;;  %v2891_v58 = vpack.c.bf16 %v151_v52, %v149_v47  ;;  %v153_v59 = vld [vmem:[#allocation6 + $0xc0] sm:$0xff]  ;;  %v2913_v60 = vpack.c.bf16 %v257_v54, %v255_v53 }
  0x8b   :  { %v254_v61 = vld [vmem:[#allocation9 + $0x60] sm:$0xff]  ;;  %v256_v62 = vld [vmem:[#allocation9 + $0x70] sm:$0xff]  ;;  %v2893_v63 = vpack.c.bf16 %v156_v56, %v154_v55  ;;  %v259_v2 = vld [vmem:[#allocation9 + $0x88] sm:$0xff] }
  0x8c   :  { %2908 = vmatpush1.bf16.msra.mxu1 %v2907_v45  ;;  %v155_v1 = vld [vmem:[#allocation6 + $0xd0] sm:$0xff]  ;;  %v261_v3 = vld [vmem:[#allocation9 + $0x98] sm:$0xff]  ;;  %v158_v4 = vld [vmem:[#allocation6 + $0xe8] sm:$0xff]  ;;  %v2915_v6 = vpack.c.bf16 %v256_v62, %v254_v61 }
  0x8d   :  { %2884 = vmatpush1.bf16.msra.mxu0 %v2883_v30  ;;  %2910 = vmatprep.subr.bf16.mxu1 %v2909_v48  ;;  %v160_v5 = vld [vmem:[#allocation6 + $0xf8] sm:$0xff]  ;;  %v2895_v7 = vpack.c.bf16 %v155_v1, %v153_v59  ;;  %v157_v8 = vld [vmem:[#allocation6 + $0xe0] sm:$0xff]  ;;  %v2917_v9 = vpack.c.bf16 %v261_v3, %v259_v2  ;;  %v260_v11 = vld [vmem:[#allocation9 + $0x90] sm:$0xff] }
  0x8e   :  { %2886 = vmatprep.subr.bf16.mxu0 %v2885_v36  ;;  %v258_v10 = vld [vmem:[#allocation9 + $0x80] sm:$0xff]  ;;  %v2897_v12 = vpack.c.bf16 %v160_v5, %v158_v4  ;;  %v159_v13 = vld [vmem:[#allocation6 + $0xf0] sm:$0xff]  ;;  %v263_v14 = vld [vmem:[#allocation9 + $0xa8] sm:$0xff] }
  0x8f   :  { %v265_v15 = vld [vmem:[#allocation9 + $0xb8] sm:$0xff]  ;;  %v2919_v16 = vpack.c.bf16 %v260_v11, %v258_v10  ;;  %v2899_v17 = vpack.c.bf16 %v159_v13, %v157_v8  ;;  %v262_v19 = vld [vmem:[#allocation9 + $0xa0] sm:$0xff]  ;;  %v264_v20 = vld [vmem:[#allocation9 + $0xb0] sm:$0xff] }
  0x90   :  { %2912 = vmatpush1.bf16.msra.mxu1 %v2911_v57  ;;  %v2921_v18 = vpack.c.bf16 %v265_v15, %v263_v14  ;;  %v267_v21 = vld [vmem:[#allocation9 + $0xc8] sm:$0xff]  ;;  %v269_v22 = vld [vmem:[#allocation9 + $0xd8] sm:$0xff]  ;;  %v2923_v23 = vpack.c.bf16 %v264_v20, %v262_v19  ;;  %v127_v24 = vld [vmem:[#allocation3] sm:$0xff] }
  0x91   :  { %2888 = vmatpush1.bf16.msra.mxu0 %v2887_v46  ;;  %2914 = vmatprep.subr.bf16.mxu1 %v2913_v60  ;;  %v2925_v25 = vpack.c.bf16 %v269_v22, %v267_v21  ;;  %v266_v26 = vld [vmem:[#allocation9 + $0xc0] sm:$0xff]  ;;  %v268_v27 = vld [vmem:[#allocation9 + $0xd0] sm:$0xff]  ;;  %v271_v28 = vld [vmem:[#allocation9 + $0xe8] sm:$0xff] }
  0x92   :  { %2890 = vmatprep.subr.bf16.mxu0 %v2889_v51  ;;  %v273_v29 = vld [vmem:[#allocation9 + $0xf8] sm:$0xff]  ;;  %v2927_v30 = vpack.c.bf16 %v268_v27, %v266_v26  ;;  %v270_v33 = vld [vmem:[#allocation9 + $0xe0] sm:$0xff]  ;;  %v272_v34 = vld [vmem:[#allocation9 + $0xf0] sm:$0xff] }
  0x93   :  { %v128_v31 = vld [vmem:[#allocation3 + $0x8] sm:$0xff]  ;;  %v2929_v32 = vpack.c.bf16 %v273_v29, %v271_v28  ;;  %v275_v35 = vld [vmem:[#allocation9 + $0x108] sm:$0xff]  ;;  %v2931_v37 = vpack.c.bf16 %v272_v34, %v270_v33  ;;  %v274_v39 = vld [vmem:[#allocation9 + $0x100] sm:$0xff] }
  0x94   :  { %2916 = vmatpush1.bf16.msra.mxu1 %v2915_v6  ;;  %v277_v36 = vld [vmem:[#allocation9 + $0x118] sm:$0xff]  ;;  %v276_v40 = vld [vmem:[#allocation9 + $0x110] sm:$0xff]  ;;  %v279_v41 = vld [vmem:[#allocation9 + $0x128] sm:$0xff] }
  0x95   :  { %2892 = vmatpush1.bf16.msra.mxu0 %v2891_v58  ;;  %2918 = vmatprep.subr.bf16.mxu1 %v2917_v9  ;;  %v2933_v38 = vpack.c.bf16 %v277_v36, %v275_v35  ;;  %v281_v42 = vld [vmem:[#allocation9 + $0x138] sm:$0xff]  ;;  %v2935_v43 = vpack.c.bf16 %v276_v40, %v274_v39  ;;  %v278_v44 = vld [vmem:[#allocation9 + $0x120] sm:$0xff]  ;;  %v280_v45 = vld [vmem:[#allocation9 + $0x130] sm:$0xff] }
  0x96   :  { %2894 = vmatprep.subr.bf16.mxu0 %v2893_v63  ;;  %v283_v46 = vld [vmem:[#allocation9 + $0x148] sm:$0xff]  ;;  %v285_v47 = vld [vmem:[#allocation9 + $0x158] sm:$0xff]  ;;  %v2939_v48 = vpack.c.bf16 %v280_v45, %v278_v44  ;;  %v282_v50 = vld [vmem:[#allocation9 + $0x140] sm:$0xff] }
  0x97   :  { %v2941_v49 = vpack.c.bf16 %v285_v47, %v283_v46  ;;  %v284_v51 = vld [vmem:[#allocation9 + $0x150] sm:$0xff]  ;;  %v287_v53 = vld [vmem:[#allocation9 + $0x168] sm:$0xff]  ;;  %v289_v54 = vld [vmem:[#allocation9 + $0x178] sm:$0xff] }
  0x98   :  { %2920 = vmatpush1.bf16.msra.mxu1 %v2919_v16  ;;  %v2943_v52 = vpack.c.bf16 %v284_v51, %v282_v50  ;;  %v2945_v55 = vpack.c.bf16 %v289_v54, %v287_v53  ;;  %v286_v56 = vld [vmem:[#allocation9 + $0x160] sm:$0xff]  ;;  %v288_v57 = vld [vmem:[#allocation9 + $0x170] sm:$0xff]  ;;  %v383_v59 = vld [vmem:[#allocation11 + $0x8] sm:$0xff] }
  0x99   :  { %2896 = vmatpush1.bf16.msra.mxu0 %v2895_v7  ;;  %2922 = vmatprep.subr.bf16.mxu1 %v2921_v18  ;;  %v2947_v58 = vpack.c.bf16 %v288_v57, %v286_v56  ;;  %v385_v60 = vld [vmem:[#allocation11 + $0x18] sm:$0xff]  ;;  %v382_v61 = vld [vmem:[#allocation11] sm:$0xff]  ;;  %v384_v63 = vld [vmem:[#allocation11 + $0x10] sm:$0xff] }
  0x9a   :  { %2898 = vmatprep.subr.bf16.mxu0 %v2897_v12  ;;  %v2949_v62 = vpack.c.bf16 %v385_v60, %v383_v59  ;;  %v387_v1 = vld [vmem:[#allocation11 + $0x28] sm:$0xff]  ;;  %v389_v2 = vld [vmem:[#allocation11 + $0x38] sm:$0xff]  ;;  %v2951_v4 = vpack.c.bf16 %v384_v63, %v382_v61  ;;  %v386_v6 = vld [vmem:[#allocation11 + $0x20] sm:$0xff] }
  0x9b   :  { %v2953_v5 = vpack.c.bf16 %v389_v2, %v387_v1  ;;  %v388_v7 = vld [vmem:[#allocation11 + $0x30] sm:$0xff]  ;;  %v391_v8 = vld [vmem:[#allocation11 + $0x48] sm:$0xff]  ;;  %v393_v10 = vld [vmem:[#allocation11 + $0x58] sm:$0xff] }
  0x9c   :  { %2924 = vmatpush1.bf16.msra.mxu1 %v2923_v23  ;;  %v2955_v12 = vpack.c.bf16 %v388_v7, %v386_v6  ;;  %v2957_v14 = vpack.c.bf16 %v393_v10, %v391_v8  ;;  %v390_v15 = vld [vmem:[#allocation11 + $0x40] sm:$0xff]  ;;  %v392_v16 = vld [vmem:[#allocation11 + $0x50] sm:$0xff]  ;;  %v395_v18 = vld [vmem:[#allocation11 + $0x68] sm:$0xff] }
  0x9d   :  { %2900 = vmatpush1.bf16.msra.mxu0 %v2899_v17  ;;  %2926 = vmatprep.subr.bf16.mxu1 %v2925_v25  ;;  %v397_v19 = vld [vmem:[#allocation11 + $0x78] sm:$0xff]  ;;  %v2959_v23 = vpack.c.bf16 %v392_v16, %v390_v15  ;;  %v394_v26 = vld [vmem:[#allocation11 + $0x60] sm:$0xff]  ;;  %v396_v27 = vld [vmem:[#allocation11 + $0x70] sm:$0xff] }
  0x9e   :  { %2950 = vmatprep.subr.bf16.mxu0 %v2949_v62  ;;  %v2961_v25 = vpack.c.bf16 %v397_v19, %v395_v18  ;;  %v399_v28 = vld [vmem:[#allocation11 + $0x88] sm:$0xff]  ;;  %v401_v29 = vld [vmem:[#allocation11 + $0x98] sm:$0xff]  ;;  %v400_v33 = vld [vmem:[#allocation11 + $0x90] sm:$0xff] }
  0x9f   :  { %v403_v34 = vld [vmem:[#allocation11 + $0xa8] sm:$0xff]  ;;  %v405_v35 = vld [vmem:[#allocation11 + $0xb8] sm:$0xff]  ;;  %v404_v39 = vld [vmem:[#allocation11 + $0xb0] sm:$0xff] }
  0xa0   :  { %226 = vmatmul.mubr.f32.vlgmr.msra.gmra.mrb[0].mxu0 %v127_v24  ;;  %2928 = vmatpush1.bf16.msra.mxu1 %v2927_v30  ;;  %v2963_v30 = vpack.c.bf16 %v396_v27, %v394_v26  ;;  %v407_v40 = vld [vmem:[#allocation11 + $0xc8] sm:$0xff]  ;;  %v408_v44 = vld [vmem:[#allocation11 + $0xd0] sm:$0xff]  ;;  %v413_v46 = vld [vmem:[#allocation11 + $0xf8] sm:$0xff] }
  0xa1   :  { %231 = vmatprep.mubr.f32.mxu0 %v3447_v0  ;;  %2930 = vmatprep.subr.bf16.mxu1 %v2929_v32  ;;  %v2937_v0 = vpack.c.bf16 %v281_v42, %v279_v41  ;;  %v398_v32 = vld [vmem:[#allocation11 + $0x80] sm:$0xff]  ;;  %v409_v41 = vld [vmem:[#allocation11 + $0xd8] sm:$0xff]  ;;  %v411_v45 = vld [vmem:[#allocation11 + $0xe8] sm:$0xff] }
  0xa2   :  { %2952 = vmatpush1.bf16.msra.mxu0 %v2951_v4  ;;  %v2967_v36 = vpack.c.bf16 %v400_v33, %v398_v32  ;;  %v412_v50 = vld [vmem:[#allocation11 + $0xf0] sm:$0xff]  ;;  %v417_v53 = vld [vmem:[#allocation11 + $0x118] sm:$0xff]  ;;  %v418_v61 = vld [vmem:[#allocation11 + $0x120] sm:$0xff] }
  0xa3   :  { %2954 = vmatprep.subr.bf16.mxu0 %v2953_v5  ;;  %v416_v56 = vld [vmem:[#allocation11 + $0x110] sm:$0xff]  ;;  %v421_v59 = vld [vmem:[#allocation11 + $0x138] sm:$0xff]  ;;  %v423_v1 = vld [vmem:[#allocation11 + $0x148] sm:$0xff] }
  0xa4   :  { %232 = vmatmul.mubr.f32.gmra.mrb[2].mxu0 %v128_v31  ;;  %2932 = vmatpush1.bf16.msra.mxu1 %v2931_v37  ;;  %v2965_v31 = vpack.c.bf16 %v401_v29, %v399_v28  ;;  %v2969_v37 = vpack.c.bf16 %v405_v35, %v403_v34  ;;  %v420_v62 = vld [vmem:[#allocation11 + $0x130] sm:$0xff]  ;;  %v425_v2 = vld [vmem:[#allocation11 + $0x158] sm:$0xff]  ;;  %v422_v5 = vld [vmem:[#allocation11 + $0x140] sm:$0xff] }
  0xa5   :  { %2934 = vmatprep.subr.bf16.mxu1 %v2933_v38  ;;  %v402_v38 = vld [vmem:[#allocation11 + $0xa0] sm:$0xff]  ;;  %v2987_v63 = vpack.c.bf16 %v420_v62, %v418_v61  ;;  %v2989_v4 = vpack.c.bf16 %v425_v2, %v423_v1  ;;  %v424_v6 = vld [vmem:[#allocation11 + $0x150] sm:$0xff]  ;;  %v427_v7 = vld [vmem:[#allocation11 + $0x168] sm:$0xff] }
  0xa6   :  { %2956 = vmatpush1.bf16.msra.mxu0 %v2955_v12  ;;  %v2971_v42 = vpack.c.bf16 %v404_v39, %v402_v38  ;;  %v2991_v8 = vpack.c.bf16 %v424_v6, %v422_v5  ;;  %v429_v10 = vld [vmem:[#allocation11 + $0x178] sm:$0xff]  ;;  %v428_v12 = vld [vmem:[#allocation11 + $0x170] sm:$0xff]  ;;  %v513_v34 = vld [vmem:[#allocation12] sm:$0xff] }
  0xa7   :  { %2958 = vmatprep.subr.bf16.mxu0 %v2957_v14  ;;  %v521_v35 = vld [vmem:[#allocation14] sm:$0xff]  ;;  %vm3655_vm3 = vmpackc.low %vm568_vm1, %vm568_vm1 }
  0xa8   :  { %2936 = vmatpush1.bf16.msra.mxu1 %v2935_v43  ;;  %v2973_v43 = vpack.c.bf16 %v409_v41, %v407_v40 }
  0xa9   :  { %2938 = vmatprep.subr.bf16.mxu1 %v2937_v0  ;;  %v406_v0 = vld [vmem:[#allocation11 + $0xc0] sm:$0xff] }
  0xaa   :  { %2960 = vmatpush1.bf16.msra.mxu0 %v2959_v23  ;;  %v2975_v47 = vpack.c.bf16 %v408_v44, %v406_v0  ;;  %v523_v0 = vld [vmem:[#allocation14 + $0x10] sm:$0xff]  ;;  %v524_v44 = vld [vmem:[#allocation14 + $0x18] sm:$0xff] }
  0xab   :  { %2962 = vmatprep.subr.bf16.mxu0 %v2961_v25 }
  0xac   :  { %2940 = vmatpush1.bf16.msra.mxu1 %v2939_v48  ;;  %v2977_v48 = vpack.c.bf16 %v413_v46, %v411_v45 }
  0xad   :  { %2942 = vmatprep.subr.bf16.mxu1 %v2941_v49  ;;  %v410_v49 = vld [vmem:[#allocation11 + $0xe0] sm:$0xff] }
  0xae   :  { %2964 = vmatpush1.bf16.msra.mxu0 %v2963_v30  ;;  %v2979_v51 = vpack.c.bf16 %v412_v50, %v410_v49 }
  0xaf   :  { %2966 = vmatprep.subr.bf16.mxu0 %v2965_v31 }
  0xb0   :  { %2944 = vmatpush1.bf16.msra.mxu1 %v2943_v52  ;;  %v415_v52 = vld [vmem:[#allocation11 + $0x108] sm:$0xff] }
  0xb1   :  { %2946 = vmatprep.subr.bf16.mxu1 %v2945_v55  ;;  %v2981_v54 = vpack.c.bf16 %v417_v53, %v415_v52  ;;  %v414_v55 = vld [vmem:[#allocation11 + $0x100] sm:$0xff] }
  0xb2   :  { %2968 = vmatpush1.bf16.msra.mxu0 %v2967_v36  ;;  %v2983_v57 = vpack.c.bf16 %v416_v56, %v414_v55  ;;  %v514_v36 = vld [vmem:[#allocation12 + $0x8] sm:$0xff] }
  0xb3   :  { %2970 = vmatprep.subr.bf16.mxu0 %v2969_v37  ;;  %v522_v37 = vld [vmem:[#allocation14 + $0x8] sm:$0xff] }
  0xb4   :  { %2948 = vmatpush1.bf16.msra.mxu1 %v2947_v58  ;;  %v419_v58 = vld [vmem:[#allocation11 + $0x128] sm:$0xff] }
  0xb5   :  { %v2985_v60 = vpack.c.bf16 %v421_v59, %v419_v58 }
  0xb6   :  { %2972 = vmatpush1.bf16.msra.mxu0 %v2971_v42 }
  0xb7   :  { %2974 = vmatprep.subr.bf16.mxu0 %v2973_v43  ;;  %v515_v43 = vld [vmem:[#allocation12 + $0x10] sm:$0xff] }
  0xba   :  { %2976 = vmatpush1.bf16.msra.mxu0 %v2975_v47 }
  0xbb   :  { %2978 = vmatprep.subr.bf16.mxu0 %v2977_v48 }
  0xbe   :  { %2980 = vmatpush1.bf16.msra.mxu0 %v2979_v51 }
  0xbf   :  { %2982 = vmatprep.subr.bf16.mxu0 %v2981_v54 }
  0xc2   :  { %2984 = vmatpush1.bf16.msra.mxu0 %v2983_v57 }
  0xc3   :  { %2986 = vmatprep.subr.bf16.mxu0 %v2985_v60 }
  0xc6   :  { %2988 = vmatpush1.bf16.msra.mxu0 %v2987_v63 }
  0xc7   :  { %2990 = vmatprep.subr.bf16.mxu0 %v2989_v4 }
  0xca   :  { %2992 = vmatpush1.bf16.msra.mxu0 %v2991_v8 }
 0x173   :  { %v3615_v3 = vpop.f32.mrb[0].mxu0 }
 0x174   :  { %v3617_v9 = vpop.f32.mrb[1].mxu0  ;;  %v238_v13 = vmul.f32 %v3615_v3, %v3615_v3 }
 0x175   :  { %v239_v11 = vmul.f32 %v3617_v9, %v3617_v9 }
 0x177   :  { %v3623_v17 = vpop.f32.mrb[2].mxu0  ;;  %2565 = vmatprep.mubr.msk.f32.mxu1 %vm290_vm0, %v239_v11  ;;  %v426_v11 = vld [vmem:[#allocation11 + $0x160] sm:$0xff] }
 0x178   :  { %v3626_v20 = vpop.f32.mrb[3].mxu0  ;;  %362 = vmatmul.mubr.f32.vlgmr.msra.gmra.mrb[0].mxu1 %v238_v13  ;;  %v240_v24 = vmul.f32 %v3623_v17, %v3623_v17  ;;  %v2993_v13 = vpack.c.bf16 %v429_v10, %v427_v7  ;;  %v2995_v14 = vpack.c.bf16 %v428_v12, %v426_v11 }
 0x179   :  { %v241_v21 = vmul.f32 %v3626_v20, %v3626_v20  ;;  %v3632_v22 = vpack.i.bf16 %v3626_v20, %v3617_v9 }
 0x17a   :  { %2994 = vmatprep.subr.bf16.mxu0 %v2993_v13 }
 0x17b   :  { %3136 = vrot.lane.b32.xlu1 %v3632_v22, %s3448_s7  ;;  %2566 = vmatprep.mubr.msk.f32.mxu1 %vm290_vm0, %v241_v21 }
 0x17c   :  { %368 = vmatmul.mubr.f32.gmra.mrb[2].mxu1 %v240_v24  ;;  %2996 = vmatpush1.bf16.msra.mxu0 %v2995_v14 }
 0x1ed   :  { %v3137_v40 = vpop.permute.xlu1 %3136 }
 0x1ee   :  { %v3139_v47 = vunpack.i.h.bf16 %v3137_v40  ;;  %v3138_v48 = vunpack.i.l.bf16 %v3137_v40 }
 0x1f0   :  { %v543_v56 = vsel %vm541_vm2, %v3139_v47, 1.0  ;;  %v542_v57 = vsel %vm541_vm2, %v3138_v48, 1.0 }
 0x1f1   :  { %v3663_v61 = vpack.c.bf16 %v543_v56, %v542_v57 }
 0x24b   :  { %v363_v15 = vpop.f32.mrb[0].mxu1 }
 0x24c   :  { %v364_v16 = vadd.f32 1.1920929e-07, %v363_v15  ;;  %v365_v18 = vpop.f32.mrb[1].mxu1 }
 0x24d   :  { %v366_v19 = vadd.f32 1.1920929e-07, %v365_v18 }
 0x24e   :  { %3162 = vrsqrt.f32 %v364_v16 }
 0x24f   :  { %3164 = vrsqrt.f32 %v366_v19  ;;  %v369_v21 = vpop.f32.mrb[2].mxu1 }
 0x250   :  { %v370_v23 = vadd.f32 1.1920929e-07, %v369_v21  ;;  %v371_v24 = vpop.f32.mrb[3].mxu1 }
 0x251   :  { %v372_v25 = vadd.f32 1.1920929e-07, %v371_v24 }
 0x252   :  { %3166 = vrsqrt.f32 %v370_v23 }
 0x253   :  { %3168 = vrsqrt.f32 %v372_v25 }
 0x258   :  { %v3163_v26 = vpop.eup %3162 }
 0x259   :  { %v3165_v27 = vpop.eup %3164  ;;  %v378_v28 = vmul.f32 %v3163_v26, %v3615_v3 }
 0x25a   :  { %v379_v29 = vmul.f32 %v3165_v27, %v3617_v9 }
 0x25b   :  { %v517_v3 = vmul.f32 %v513_v34, %v378_v28 }
 0x25c   :  { %v3167_v30 = vpop.eup %3166  ;;  %2567 = vmatprep.mubr.msk.f32.mxu0 %vm290_vm0, %v379_v29  ;;  %v518_v41 = vmul.f32 %v514_v36, %v379_v29 }
 0x25d   :  { %v3169_v31 = vpop.eup %3168  ;;  %501 = vmatmul.mubr.f32.vlgmr.msra.gmra.mrb[4].mxu0 %v378_v28  ;;  %v380_v32 = vmul.f32 %v3167_v30, %v3623_v17 }
 0x25e   :  { %v381_v33 = vmul.f32 %v3169_v31, %v3626_v20  ;;  %v516_v20 = vld [vmem:[#allocation12 + $0x18] sm:$0xff] }
 0x25f   :  { %v519_v49 = vmul.f32 %v515_v43, %v380_v32 }
 0x260   :  { %2568 = vmatprep.mubr.msk.f32.mxu0 %vm290_vm0, %v381_v33  ;;  %v520_v52 = vmul.f32 %v516_v20, %v381_v33 }
 0x261   :  { %507 = vmatmul.mubr.f32.gmra.mrb[6].mxu0 %v380_v32 }
 0x330   :  { %v502_v38 = vpop.f32.mrb[4].mxu0 }
 0x331   :  { %v525_v39 = vmul.f32 %v521_v35, %v502_v38  ;;  %v504_v9 = vpop.f32.mrb[5].mxu0 }
 0x332   :  { %v526_v42 = vmul.f32 %v522_v37, %v504_v9 }
 0x333   :  { %v3645_v17 = vadd.f32 %v525_v39, %v517_v3 }
 0x334   :  { %v530_v45 = vadd.f32 %v526_v42, %v518_v41  ;;  %v508_v46 = vpop.f32.mrb[6].mxu0 }
 0x335   :  { %v527_v50 = vmul.f32 %v523_v0, %v508_v46  ;;  %v510_v51 = vpop.f32.mrb[7].mxu0  ;;  %2717 = vmatprep.mubr.msk.f32.mxu1 %vm568_vm1, %v3645_v17 }
 0x336   :  { %v528_v53 = vmul.f32 %v524_v44, %v510_v51 }
 0x337   :  { %v3649_v54 = vadd.f32 %v527_v50, %v519_v49 }
 0x338   :  { %v532_v55 = vadd.f32 %v528_v53, %v520_v52 }
 0x33a   :  { %v3659_v59 = vpack.i.bf16 %v532_v55, %v530_v45  ;;  %v3661_v60 = vpack.c.bf16 %v532_v55, %v530_v45 }
 0x33c   :  { %3141 = vrot.lane.b32.xlu1 %v3659_v59, %s3449_s15  ;;  %2999 = vmatprep.subr.msk.bf16.mxu1 %vm3655_vm3, %v3661_v60 }
 0x33d   :  { %3002 = vmatpush3.bf16.xpose.msk.msra.mxu1 %vm3655_vm3, %v3661_v60 }
 0x33e   :  { %3004 = vmatprep.subr.bf16.mxu1 %v3663_v61 }
 0x340   :  { %767 = vrot.lane.b32.xlu1 %v3649_v54, %s3449_s15 }
 0x344   :  { %2718 = vmatmul.mubr.msk.f32.vlgmr.msra.gmra.mrb[4].mxu1 %vm568_vm1, %v3649_v54 }
 0x345   :  { %3006 = vmatpush3.bf16.msra.mxu1 %v3663_v61 }
 0x3ae   :  { %v3142_v62 = vpop.permute.xlu1 %3141 }
 0x3af   :  { %v3144_v63 = vunpack.i.h.bf16 %v3142_v62  ;;  %v3143_v1 = vunpack.i.l.bf16 %v3142_v62 }
 0x3b1   :  { %v3007_v2 = vpack.c.bf16 %v3144_v63, %v3143_v1 }
 0x3b2   :  { %v768_v19 = vpop.permute.xlu1 %767 }
 0x3b3   :  { %3009 = vmatprep.subr.msk.bf16.mxu1 %vm3655_vm3, %v3007_v2  ;;  %3029 = vmatprep.subr.msk.bf16.mxu0 %vm3655_vm3, %v3007_v2 }
 0x3b4   :  { %3032 = vmatpush3.bf16.xpose.msk.msra.mxu0 %vm3655_vm3, %v3007_v2 }
 0x417   :  { %v2719_v4 = vpop.f32.mrb[4].mxu1 }
 0x418   :  { %v647_v5 = vpop.f32.mrb[5].mxu1  ;;  %v659_v7 = vsel %vm568_vm1, %v2719_v4, -inf }
 0x419   :  { %v656_v6 = vsel %vm568_vm1, %v647_v5, -inf }
 0x41a   :  { %657 = vmax.xlane.f32.xlu0 %v656_v6 }
 0x41e   :  { %660 = vmax.xlane.f32.xlu0 %v659_v7 }
 0x434   :  { %765 = vrot.lane.b32.xlu0 %v3645_v17, %s3449_s15 }
 0x4a7   :  { %v658_v8 = vpop.xlane.xlu0 %657 }
 0x4a8   :  { %v662_v10 = vsub.f32 %v647_v5, %v658_v8 }
 0x4aa   :  { %v664_v11 = vmul.f32 1.442695, %v662_v10 }
 0x4ab   :  { %v661_v12 = vpop.xlane.xlu0 %660 }
 0x4ac   :  { %3170 = vpow2.f32 %v664_v11  ;;  %v663_v13 = vsub.f32 %v2719_v4, %v661_v12 }
 0x4ae   :  { %v666_v14 = vmul.f32 1.442695, %v663_v13 }
 0x4af   :  { %v766_v18 = vpop.permute.xlu0 %765 }
 0x4b0   :  { %3172 = vpow2.f32 %v666_v14 }
 0x4b6   :  { %v3171_v15 = vpop.eup %3170 }
 0x4b7   :  { %2724 = vmatprep.mubr.msk.f32.mxu1 %vm568_vm1, %v3171_v15 }
 0x4ba   :  { %v3173_v16 = vpop.eup %3172 }
 0x4bb   :  { %2725 = vmatmul.mubr.msk.f32.vlgmr.msra.gmra.mrb[6].mxu1 %vm568_vm1, %v3173_v16 }
 0x4bc   :  { %3012 = vmatpush3.bf16.xpose.msk.msra.mxu1 %vm3655_vm3, %v3007_v2  ;;  %2731 = vmatprep.mubr.msk.f32.mxu1 %vm568_vm1, %v766_v18 }
 0x4bd   :  { %3014 = vmatprep.subr.bf16.mxu1 %v3663_v61 }
 0x4c3   :  { %2732 = vmatmul.mubr.msk.f32.vlgmr.msra.gmra.mrb[8].mxu1 %vm568_vm1, %v768_v19 }
 0x4c4   :  { %3016 = vmatpush3.bf16.msra.mxu1 %v3663_v61 }
 0x4c5   :  { %3019 = vmatprep.subr.msk.bf16.mxu1 %vm3655_vm3, %v3661_v60 }
 0x58e   :  { %v3697_v21 = vpop.f32.mrb[6].mxu1 }
 0x58f   :  { %v3699_v23 = vpop.f32.mrb[7].mxu1 }
 0x596   :  { %v2733_v24 = vpop.f32.mrb[8].mxu1 }
 0x597   :  { %v847_v25 = vpop.f32.mrb[9].mxu1  ;;  %v859_v26 = vsel %vm568_vm1, %v2733_v24, -inf }
 0x598   :  { %860 = vmax.xlane.f32.xlu0 %v859_v26  ;;  %v856_v27 = vsel %vm568_vm1, %v847_v25, -inf }
 0x599   :  { %857 = vmax.xlane.f32.xlu1 %v856_v27 }
 0x5aa   :  { %987 = vrot.lane.b32.xlu1 %v3645_v17, %s3450_s23 }
 0x5ae   :  { %989 = vrot.lane.b32.xlu0 %v3649_v54, %s3450_s23  ;;  %1179 = vrot.lane.b32.xlu1 %v3645_v17, %s3451_s25 }
 0x5b2   :  { %1181 = vrot.lane.b32.xlu1 %v3649_v54, %s3451_s25 }
 0x625   :  { %v861_v28 = vpop.xlane.xlu0 %860 }
 0x626   :  { %v863_v29 = vsub.f32 %v2733_v24, %v861_v28  ;;  %v858_v30 = vpop.xlane.xlu1 %857 }
 0x627   :  { %v862_v31 = vsub.f32 %v847_v25, %v858_v30 }
 0x628   :  { %v866_v32 = vmul.f32 1.442695, %v863_v29 }
 0x629   :  { %v864_v33 = vmul.f32 1.442695, %v862_v31  ;;  %v990_v3 = vpop.permute.xlu0 %989 }
 0x62a   :  { %v988_v34 = vpop.permute.xlu1 %987 }
 0x62b   :  { %3174 = vpow2.f32 %v864_v33 }
 0x62c   :  { %3176 = vpow2.f32 %v866_v32 }
 0x62e   :  { %v1180_v35 = vpop.permute.xlu1 %1179 }
 0x62f   :  { %2759 = vmatprep.mubr.msk.f32.mxu0 %vm568_vm1, %v1180_v35 }
 0x632   :  { %v1182_v36 = vpop.permute.xlu1 %1181 }
 0x633   :  { %2760 = vmatmul.mubr.msk.f32.vlgmr.msra.gmra.mrb[8].mxu0 %vm568_vm1, %v1182_v36 }
 0x635   :  { %v3175_v37 = vpop.eup %3174 }
 0x636   :  { %v3177_v38 = vpop.eup %3176  ;;  %2738 = vmatprep.mubr.msk.f32.mxu1 %vm568_vm1, %v3175_v37 }
 0x637   :  { %2739 = vmatmul.mubr.msk.f32.vlgmr.msra.gmra.mrb[10].mxu1 %vm568_vm1, %v3177_v38 }
 0x638   :  { %3022 = vmatpush3.bf16.xpose.msk.msra.mxu1 %vm3655_vm3, %v3661_v60  ;;  %2745 = vmatprep.mubr.msk.f32.mxu1 %vm568_vm1, %v988_v34 }
 0x639   :  { %3024 = vmatprep.subr.bf16.mxu1 %v3663_v61 }
 0x63f   :  { %2746 = vmatmul.mubr.msk.f32.vlgmr.msra.gmra.mrb[12].mxu1 %vm568_vm1, %v990_v3 }
 0x640   :  { %3026 = vmatpush3.bf16.msra.mxu1 %v3663_v61 }
 0x641   :  { %3034 = vmatprep.subr.bf16.mxu1 %v3663_v61 }
 0x706   :  { %v2761_v39 = vpop.f32.mrb[8].mxu0 }
 0x707   :  { %v1253_v9 = vpop.f32.mrb[9].mxu0  ;;  %v1265_v45 = vsel %vm568_vm1, %v2761_v39, -inf }
 0x708   :  { %v1262_v44 = vsel %vm568_vm1, %v1253_v9, -inf }
 0x70a   :  { %v3723_v40 = vpop.f32.mrb[10].mxu1 }
 0x70b   :  { %v3725_v41 = vpop.f32.mrb[11].mxu1 }
 0x712   :  { %v2747_v42 = vpop.f32.mrb[12].mxu1 }
 0x713   :  { %v1061_v43 = vpop.f32.mrb[13].mxu1  ;;  %v1073_v0 = vsel %vm568_vm1, %v2747_v42, -inf }
 0x714   :  { %1074 = vmax.xlane.f32.xlu0 %v1073_v0  ;;  %v1070_v20 = vsel %vm568_vm1, %v1061_v43, -inf }
 0x715   :  { %1071 = vmax.xlane.f32.xlu1 %v1070_v20 }
 0x719   :  { %1263 = vmax.xlane.f32.xlu1 %v1262_v44 }
 0x71d   :  { %1266 = vmax.xlane.f32.xlu1 %v1265_v45 }
 0x72a   :  { %3146 = vrot.lane.b32.xlu0 %v3659_v59, %s3450_s23 }
 0x72e   :  { %1553 = vrot.lane.b32.xlu1 %v3645_v17, %s3448_s7 }
 0x732   :  { %1555 = vrot.lane.b32.xlu1 %v3649_v54, %s3448_s7 }
 0x7a1   :  { %v1075_v46 = vpop.xlane.xlu0 %1074 }
 0x7a2   :  { %v1077_v47 = vsub.f32 %v2747_v42, %v1075_v46  ;;  %v1072_v48 = vpop.xlane.xlu1 %1071 }
 0x7a3   :  { %v1076_v49 = vsub.f32 %v1061_v43, %v1072_v48 }
 0x7a4   :  { %v1080_v50 = vmul.f32 1.442695, %v1077_v47 }
 0x7a5   :  { %v1078_v51 = vmul.f32 1.442695, %v1076_v49  ;;  %v3147_v60 = vpop.permute.xlu0 %3146 }
 0x7a6   :  { %v1264_v52 = vpop.xlane.xlu1 %1263  ;;  %v3149_v63 = vunpack.i.h.bf16 %v3147_v60  ;;  %v3148_v1 = vunpack.i.l.bf16 %v3147_v60 }
 0x7a7   :  { %3178 = vpow2.f32 %v1078_v51  ;;  %v1268_v53 = vsub.f32 %v1253_v9, %v1264_v52  ;;  %v3454_v9 = vmov 32  }
 0x7a8   :  { %3180 = vpow2.f32 %v1080_v50  ;;  %v3738_v5 = vpack.c.bf16 %v3149_v63, %v3148_v1  ;;  %3161 = vset.pattern.permute.xlu1 %v3454_v9  ;;  %3160 = vset.pattern.permute.xlu0 %v3454_v9 }
 0x7a9   :  { %v1270_v55 = vmul.f32 1.442695, %v1268_v53 }
 0x7aa   :  { %v1267_v56 = vpop.xlane.xlu1 %1266 }
 0x7ab   :  { %3182 = vpow2.f32 %v1270_v55  ;;  %v1269_v57 = vsub.f32 %v2761_v39, %v1267_v56 }
 0x7ad   :  { %v1272_v62 = vmul.f32 1.442695, %v1269_v57 }
 0x7ae   :  { %v1554_v8 = vpop.permute.xlu1 %1553 }
 0x7af   :  { %3184 = vpow2.f32 %v1272_v62 }
 0x7b1   :  { %v3179_v2 = vpop.eup %3178 }
 0x7b2   :  { %v3181_v4 = vpop.eup %3180  ;;  %2752 = vmatprep.mubr.msk.f32.mxu1 %vm568_vm1, %v3179_v2  ;;  %v1556_v10 = vpop.permute.xlu1 %1555 }
 0x7b3   :  { %2753 = vmatmul.mubr.msk.f32.vlgmr.msra.gmra.mrb[14].mxu1 %vm568_vm1, %v3181_v4 }
 0x7b4   :  { %3036 = vmatpush3.bf16.msra.mxu1 %v3663_v61 }
 0x7b5   :  { %v3183_v6 = vpop.eup %3182  ;;  %3055 = vmatprep.subr.msk.bf16.mxu1 %vm3655_vm3, %v3738_v5 }
 0x7b6   :  { %2766 = vmatprep.mubr.msk.f32.mxu1 %vm568_vm1, %v3183_v6 }
 0x7b9   :  { %v3185_v7 = vpop.eup %3184 }
 0x7ba   :  { %2767 = vmatmul.mubr.msk.f32.vlgmr.msra.gmra.mrb[16].mxu1 %vm568_vm1, %v3185_v7 }
 0x7bb   :  { %2795 = vmatprep.mubr.msk.f32.mxu1 %vm568_vm1, %v1554_v8 }
 0x7bd   :  { %3058 = vmatpush3.bf16.xpose.msk.msra.mxu1 %vm3655_vm3, %v3738_v5 }
 0x7c4   :  { %2796 = vmatmul.mubr.msk.f32.vlgmr.msra.gmra.mrb[18].mxu1 %vm568_vm1, %v1556_v10 }
 0x886   :  { %v3752_v61 = vpop.f32.mrb[14].mxu1 }
 0x887   :  { %v3754_v11 = vpop.f32.mrb[15].mxu1 }
 0x88d   :  { %v3756_v12 = vpop.f32.mrb[16].mxu1 }
 0x88e   :  { %v3758_v13 = vpop.f32.mrb[17].mxu1 }
 0x897   :  { %v2797_v14 = vpop.f32.mrb[18].mxu1 }
 0x898   :  { %v1635_v15 = vpop.f32.mrb[19].mxu1  ;;  %v1647_v16 = vsel %vm568_vm1, %v2797_v14, -inf }
 0x899   :  { %1648 = vmax.xlane.f32.xlu1 %v1647_v16  ;;  %v1644_v18 = vsel %vm568_vm1, %v1635_v15, -inf  ;;  %v3820_v16 = vstv %s3942_s0  ;;  %s3455_s0 = smov [#allocation15]  }
 0x89a   :  { %1645 = vmax.xlane.f32.xlu0 %v1644_v18  ;;  %s2550_s30 = sshll.u32 %s3455_s0, 4  ;;  %s2551_s30 = int_to_ptr.vmem [resolvable:$true] %s2550_s30 }
 0x89b   :  { %s3404_s2 = scalar_lea.vmem %s2551_s30, 256  ;;  %p3409_p1 = scmp.lt.s32.totalorder %s2551_s30, %s2551_s30 }
 0x89c   :  { %p3405_p0 = scmp.ne.s32.totalorder %s2551_s30, %s3404_s2  ;;  %p3410_p2 = scmp.lt.s32.totalorder %s3404_s2, %s3404_s2 }
 0x89e   :  { %p3411_p3 = por %p3410_p2, %p3409_p1 }
 0x8a0   :  { %p3412_p4 = pnand %p3411_p3, %p3405_p0 }
 0x8aa   :  { %3156 = vrot.lane.b32.xlu1 %v3659_v59, %s3451_s25 }
 0x8ae   :  { %1755 = vrot.lane.b32.xlu1 %v3649_v54, %s3452_s26 }
 0x8b0   :  { %3151 = vrot.lane.b32.xlu0 %v3632_v22, %s3453_s27 }
 0x8b4   :  { %1753 = vrot.lane.b32.xlu0 %v3645_v17, %s3452_s26 }
 0x926   :  { %v1649_v19 = vpop.xlane.xlu1 %1648 }
 0x927   :  { %v1651_v24 = vsub.f32 %v2797_v14, %v1649_v19  ;;  %v1646_v25 = vpop.xlane.xlu0 %1645 }
 0x928   :  { %v1650_v26 = vsub.f32 %v1635_v15, %v1646_v25 }
 0x929   :  { %v1654_v27 = vmul.f32 1.442695, %v1651_v24 }
 0x92a   :  { %v1652_v28 = vmul.f32 1.442695, %v1650_v26  ;;  %v3157_v29 = vpop.permute.xlu1 %3156 }
 0x92b   :  { %v3152_v30 = vpop.permute.xlu0 %3151  ;;  %v3159_v32 = vunpack.i.h.bf16 %v3157_v29  ;;  %v3158_v33 = vunpack.i.l.bf16 %v3157_v29 }
 0x92c   :  { %3186 = vpow2.f32 %v1652_v28  ;;  %v3154_v31 = vunpack.i.h.bf16 %v3152_v30  ;;  %v3153_v59 = vunpack.i.l.bf16 %v3152_v30 }
 0x92d   :  { %3188 = vpow2.f32 %v1654_v27  ;;  %v3772_v36 = vpack.c.bf16 %v3159_v32, %v3158_v33 }
 0x92e   :  { %v551_v34 = vsel %vm541_vm2, %v3154_v31, 1.0  ;;  %v550_v22 = vsel %vm541_vm2, %v3153_v59, 1.0  ;;  %v1756_v39 = vpop.permute.xlu1 %1755  ;;  %3190 = vrcp.f32 %v3756_v12 }
 0x92f   :  { %v3770_v35 = vpack.c.bf16 %v551_v34, %v550_v22  ;;  %v1754_v3 = vpop.permute.xlu0 %1753  ;;  %3192 = vrcp.f32 %v3754_v11 }
 0x930   :  { %3194 = vrcp.f32 %v3758_v13 }
 0x931   :  { %3060 = vmatprep.subr.bf16.mxu1 %v3770_v35  ;;  %3196 = vrcp.f32 %v3725_v41 }
 0x932   :  { %3062 = vmatpush3.bf16.msra.mxu1 %v3770_v35  ;;  %3198 = vrcp.f32 %v3752_v61 }
 0x933   :  { %3065 = vmatprep.subr.msk.bf16.mxu1 %vm3655_vm3, %v3772_v36  ;;  %3200 = vrcp.f32 %v3699_v23 }
 0x934   :  { %3202 = vrcp.f32 %v3723_v40 }
 0x935   :  { %3204 = vrcp.f32 %v3697_v21 }
 0x936   :  { %v3187_v37 = vpop.eup %3186 }
 0x937   :  { %v3189_v38 = vpop.eup %3188  ;;  %2802 = vmatprep.mubr.msk.f32.mxu1 %vm568_vm1, %v3187_v37 }
 0x938   :  { %2803 = vmatmul.mubr.msk.f32.vlgmr.msra.gmra.mrb[20].mxu1 %vm568_vm1, %v3189_v38  ;;  %v3191_v46 = vpop.eup %3190 }
 0x939   :  { %2809 = vmatprep.mubr.msk.f32.mxu1 %vm568_vm1, %v1754_v3  ;;  %v3193_v47 = vpop.eup %3192 }
 0x93a   :  { %v3195_v48 = vpop.eup %3194 }
 0x93b   :  { %3068 = vmatpush3.bf16.xpose.msk.msra.mxu1 %vm3655_vm3, %v3772_v36 }
 0x93c   :  { %3070 = vmatprep.subr.bf16.mxu1 %v3770_v35 }
 0x942   :  { %2810 = vmatmul.mubr.msk.f32.vlgmr.msra.gmra.mrb[22].mxu1 %vm568_vm1, %v1756_v39 }
 0x943   :  { %3072 = vmatpush3.bf16.msra.mxu1 %v3770_v35 }
 0x944   :  { %3083 = vmatprep.subr.msk.bf16.mxu1 %vm3655_vm3, %v3738_v5 }
 0xa0b   :  { %v3791_v42 = vpop.f32.mrb[20].mxu1 }
 0xa0c   :  { %v3793_v43 = vpop.f32.mrb[21].mxu1 }
 0xa15   :  { %v2811_v0 = vpop.f32.mrb[22].mxu1 }
 0xa16   :  { %v1835_v20 = vpop.f32.mrb[23].mxu1  ;;  %v1847_v44 = vsel %vm568_vm1, %v2811_v0, -inf }
 0xa17   :  { %1848 = vmax.xlane.f32.xlu1 %v1847_v44  ;;  %v1844_v45 = vsel %vm568_vm1, %v1835_v20, -inf }
 0xa18   :  { %1845 = vmax.xlane.f32.xlu0 %v1844_v45 }
 0xa28   :  { %2058 = vrot.lane.b32.xlu1 %v3649_v54, %s3453_s27 }
 0xa2c   :  { %2250 = vrot.lane.b32.xlu1 %v3649_v54, %s3438_s16  ;;  %v3197_v54 = vpop.eup %3196 }
 0xa2d   :  { %v3199_v49 = vpop.eup %3198 }
 0xa2e   :  { %2056 = vrot.lane.b32.xlu0 %v3645_v17, %s3453_s27  ;;  %v3201_v50 = vpop.eup %3200 }
 0xa2f   :  { %v3203_v51 = vpop.eup %3202 }
 0xa30   :  { %1366 = vperm.xlu1 %3161, %v3191_v46   ;;  %v3205_v52 = vpop.eup %3204 }
 0xa32   :  { %2248 = vrot.lane.b32.xlu0 %v3645_v17, %s3438_s16 }
 0xa34   :  { %1169 = vperm.xlu1 %3161, %v3193_v47  }
 0xa36   :  { %1361 = vperm.xlu0 %3160, %v3195_v48   ;;  %v556_v48 = vld [vmem:[#allocation8 + $0x20] sm:$0xff] }
 0xa38   :  { %955 = vperm.xlu1 %3161, %v3197_v54   ;;  %v557_v54 = vld [vmem:[#allocation8 + $0x28] sm:$0xff] }
 0xa3a   :  { %1174 = vperm.xlu0 %3160, %v3199_v49   ;;  %v3037_v49 = vpack.c.bf16 %v557_v54, %v556_v48  ;;  %v562_v48 = vld [vmem:[#allocation8 + $0x50] sm:$0xff]  ;;  %v563_v54 = vld [vmem:[#allocation8 + $0x58] sm:$0xff] }
 0xa3c   :  { %755 = vperm.xlu1 %3161, %v3201_v50   ;;  %v558_v50 = vld [vmem:[#allocation8 + $0x30] sm:$0xff]  ;;  %3038 = vmatprep.subr.bf16.mxu0 %v3037_v49 }
 0xa3d   :  { %3040 = vmatpush3.bf16.msra.mxu0 %v3037_v49 }
 0xa3e   :  { %960 = vperm.xlu0 %3160, %v3203_v51   ;;  %v559_v51 = vld [vmem:[#allocation8 + $0x38] sm:$0xff] }
 0xa42   :  { %760 = vperm.xlu0 %3160, %v3205_v52   ;;  %v3041_v52 = vpack.c.bf16 %v559_v51, %v558_v50 }
 0xa44   :  { %3042 = vmatprep.subr.bf16.mxu0 %v3041_v52 }
 0xa45   :  { %3044 = vmatpush3.bf16.msra.mxu0 %v3041_v52 }
 0xaa4   :  { %v1849_v53 = vpop.xlane.xlu1 %1848 }
 0xaa5   :  { %v1851_v17 = vsub.f32 %v2811_v0, %v1849_v53  ;;  %v1846_v55 = vpop.xlane.xlu0 %1845  ;;  %v552_v53 = vld [vmem:[#allocation8] sm:$0xff] }
 0xaa6   :  { %v1850_v56 = vsub.f32 %v1835_v20, %v1846_v55 }
 0xaa7   :  { %v1854_v57 = vmul.f32 1.442695, %v1851_v17  ;;  %v553_v17 = vld [vmem:[#allocation8 + $0x8] sm:$0xff] }
 0xaa8   :  { %v1852_v60 = vmul.f32 1.442695, %v1850_v56  ;;  %v2059_v62 = vpop.permute.xlu1 %2058  ;;  %v3045_v55 = vpack.c.bf16 %v553_v17, %v552_v53 }
 0xaa9   :  { %v2057_v63 = vpop.permute.xlu0 %2056 }
 0xaaa   :  { %3206 = vpow2.f32 %v1852_v60  ;;  %3046 = vmatprep.subr.bf16.mxu0 %v3045_v55 }
 0xaab   :  { %3208 = vpow2.f32 %v1854_v57 }
 0xaac   :  { %v2251_v1 = vpop.permute.xlu1 %2250 }
 0xaad   :  { %v2249_v4 = vpop.permute.xlu0 %2248 }
 0xab0   :  { %v1367_v2 = vpop.permute.xlu1 %1366 }
 0xab1   :  { %v1370_v14 = vmul.f32 %v3756_v12, %v1367_v2 }
 0xab3   :  { %v1372_v25 = vmul.f32 %v1370_v14, %v3820_v16 }
 0xab4   :  { %v3207_v6 = vpop.eup %3206  ;;  %v1170_v7 = vpop.permute.xlu1 %1169 }
 0xab5   :  { %v3209_v8 = vpop.eup %3208  ;;  %2816 = vmatprep.mubr.msk.f32.mxu1 %vm568_vm1, %v3207_v6  ;;  %v1362_v10 = vpop.permute.xlu0 %1361  ;;  %v1177_v18 = vmul.f32 %v1170_v7, %v3754_v11 }
 0xab6   :  { %v1369_v15 = vmul.f32 %v1362_v10, %v3758_v13  ;;  %2817 = vmatmul.mubr.msk.f32.vlgmr.msra.gmra.mrb[24].mxu1 %vm568_vm1, %v3209_v8 }
 0xab7   :  { %3086 = vmatpush3.bf16.xpose.msk.msra.mxu1 %vm3655_vm3, %v3738_v5  ;;  %2834 = vmatprep.mubr.msk.f32.mxu1 %vm568_vm1, %v2057_v63 }
 0xab8   :  { %v1371_v19 = vmul.f32 %v1369_v15, %v3820_v16  ;;  %3093 = vmatprep.subr.msk.bf16.mxu1 %vm3655_vm3, %v3772_v36  ;;  %v956_v12 = vpop.permute.xlu1 %955 }
 0xab9   :  { %v963_v13 = vmul.f32 %v956_v12, %v3725_v41  ;;  %v1175_v24 = vpop.permute.xlu0 %1174 }
 0xaba   :  { %v1178_v26 = vmul.f32 %v3752_v61, %v1175_v24  ;;  %v3834_v27 = vsub.f32 %v1177_v18, %v1371_v19 }
 0xabb   :  { %v966_v11 = vmul.f32 %v3820_v16, %v963_v13 }
 0xabc   :  { %v3836_v5 = vsub.f32 %v1178_v26, %v1372_v25  ;;  %v756_v28 = vpop.permute.xlu1 %755  ;;  %v1375_v20 = vmul.f32 %v3834_v27, %v3834_v27 }
 0xabd   :  { %v763_v29 = vmul.f32 %v756_v28, %v3699_v23  ;;  %v961_v30 = vpop.permute.xlu0 %960 }
 0xabe   :  { %2835 = vmatmul.mubr.msk.f32.vlgmr.msra.gmra.mrb[26].mxu1 %vm568_vm1, %v2059_v62  ;;  %v964_v31 = vmul.f32 %v3723_v40, %v961_v30  ;;  %v1376_v39 = vmul.f32 %v3836_v5, %v3836_v5  ;;  %v1377_v45 = vsel %vm541_vm2, %v1375_v20, 0.0 }
 0xabf   :  { %v3842_v41 = vsub.f32 %v763_v29, %v966_v11  ;;  %3096 = vmatpush3.bf16.xpose.msk.msra.mxu1 %vm3655_vm3, %v3772_v36  ;;  %2848 = vmatprep.mubr.msk.f32.mxu1 %vm568_vm1, %v2249_v4 }
 0xac0   :  { %v967_v59 = vmul.f32 %v3820_v16, %v964_v31  ;;  %v1380_v9 = vsel %vm541_vm2, %v1376_v39, 0.0 }
 0xac1   :  { %v761_v61 = vpop.permute.xlu0 %760  ;;  %v970_v0 = vmul.f32 %v3842_v41, %v3842_v41 }
 0xac2   :  { %v764_v32 = vmul.f32 %v3697_v21, %v761_v61 }
 0xac3   :  { %v972_v44 = vsel %vm541_vm2, %v970_v0, 0.0 }
 0xac4   :  { %v3850_v33 = vsub.f32 %v764_v32, %v967_v59 }
 0xac6   :  { %2849 = vmatmul.mubr.msk.f32.vlgmr.msra.gmra.mrb[28].mxu1 %vm568_vm1, %v2251_v1  ;;  %v971_v46 = vmul.f32 %v3850_v33, %v3850_v33 }
 0xac8   :  { %v975_v47 = vsel %vm541_vm2, %v971_v46, 0.0 }
 0xb89   :  { %v2818_v23 = vpop.f32.mrb[24].mxu1 }
 0xb8a   :  { %3210 = vrcp.f32 %v2818_v23  ;;  %v1928_v40 = vpop.f32.mrb[25].mxu1 }
 0xb8b   :  { %3212 = vrcp.f32 %v1928_v40 }
 0xb8c   :  { %3214 = vrcp.f32 %v3791_v42 }
 0xb8d   :  { %3216 = vrcp.f32 %v3793_v43 }
 0xb91   :  { %v3855_v58 = vpop.f32.mrb[26].mxu1 }
 0xb92   :  { %v3857_v34 = vpop.f32.mrb[27].mxu1  ;;  %v2142_v19 = vsel %vm568_vm1, %v3855_v58, -inf }
 0xb94   :  { %v3211_v22 = vpop.eup %3210 }
 0xb95   :  { %v3213_v36 = vpop.eup %3212  ;;  %1948 = vperm.xlu0 %3160, %v3211_v22  }
 0xb96   :  { %1943 = vperm.xlu1 %3161, %v3213_v36   ;;  %v3215_v21 = vpop.eup %3214  ;;  %v554_v36 = vld [vmem:[#allocation8 + $0x10] sm:$0xff] }
 0xb97   :  { %v3217_v37 = vpop.eup %3216 }
 0xb99   :  { %v3859_v38 = vpop.f32.mrb[28].mxu1  ;;  %1748 = vperm.xlu0 %3160, %v3215_v21   ;;  %v555_v21 = vld [vmem:[#allocation8 + $0x18] sm:$0xff] }
 0xb9a   :  { %v3861_v3 = vpop.f32.mrb[29].mxu1  ;;  %1743 = vperm.xlu1 %3161, %v3217_v37   ;;  %v2334_v12 = vsel %vm568_vm1, %v3859_v38, -inf  ;;  %v3049_v0 = vpack.c.bf16 %v555_v21, %v554_v36 }
 0xb9b   :  { %v2331_v13 = vsel %vm568_vm1, %v3861_v3, -inf }
 0xbb8   :  { %1381 = vadd.xlane.f32.xlu0 %v1380_v9 }
 0xbbc   :  { %973 = vadd.xlane.f32.xlu0 %v972_v44  ;;  %v560_v44 = vld [vmem:[#allocation8 + $0x40] sm:$0xff] }
 0xbbe   :  { %1378 = vadd.xlane.f32.xlu1 %v1377_v45  ;;  %v561_v45 = vld [vmem:[#allocation8 + $0x48] sm:$0xff] }
 0xbbf   :  { %v3073_v46 = vpack.c.bf16 %v561_v45, %v560_v44 }
 0xbc2   :  { %976 = vadd.xlane.f32.xlu1 %v975_v47 }
 0xc14   :  { %v1949_v56 = vpop.permute.xlu0 %1948 }
 0xc15   :  { %v1952_v57 = vmul.f32 %v2818_v23, %v1949_v56  ;;  %v1944_v60 = vpop.permute.xlu1 %1943 }
 0xc16   :  { %v1951_v62 = vmul.f32 %v1944_v60, %v1928_v40 }
 0xc17   :  { %v1954_v1 = vmul.f32 %v1952_v57, %v3820_v16 }
 0xc18   :  { %v1749_v63 = vpop.permute.xlu0 %1748  ;;  %v1953_v6 = vmul.f32 %v1951_v62, %v3820_v16 }
 0xc19   :  { %v1752_v2 = vmul.f32 %v3791_v42, %v1749_v63  ;;  %v1744_v4 = vpop.permute.xlu1 %1743 }
 0xc1a   :  { %v1751_v7 = vmul.f32 %v1744_v4, %v3793_v43  ;;  %v2139_v43 = vsel %vm568_vm1, %v3857_v34, -inf }
 0xc1b   :  { %v3879_v8 = vsub.f32 %v1752_v2, %v1954_v1 }
 0xc1c   :  { %v3881_v10 = vsub.f32 %v1751_v7, %v1953_v6 }
 0xc1d   :  { %v1958_v14 = vmul.f32 %v3879_v8, %v3879_v8 }
 0xc1e   :  { %v1957_v15 = vmul.f32 %v3881_v10, %v3881_v10 }
 0xc1f   :  { %v1962_v18 = vsel %vm541_vm2, %v1958_v14, 0.0 }
 0xc20   :  { %1963 = vadd.xlane.f32.xlu1 %v1962_v18  ;;  %v1959_v42 = vsel %vm541_vm2, %v1957_v15, 0.0 }
 0xc21   :  { %1960 = vadd.xlane.f32.xlu0 %v1959_v42 }
 0xc24   :  { %2143 = vmax.xlane.f32.xlu1 %v2142_v19 }
 0xc25   :  { %2140 = vmax.xlane.f32.xlu0 %v2139_v43 }
 0xc28   :  { %2335 = vmax.xlane.f32.xlu1 %v2334_v12 }
 0xc29   :  { %2332 = vmax.xlane.f32.xlu0 %v2331_v13 }
 0xc45   :  { %v1382_v24 = vpop.xlane.xlu0 %1381 }
 0xc46   :  { %v1384_v25 = vmul.f32 0.03125, %v1382_v24 }
 0xc48   :  { %v1386_v28 = vadd.f32 1.1920929e-07, %v1384_v25 }
 0xc49   :  { %v974_v26 = vpop.xlane.xlu0 %973 }
 0xc4a   :  { %v979_v11 = vmul.f32 0.03125, %v974_v26  ;;  %3218 = vrsqrt.f32 %v1386_v28 }
 0xc4b   :  { %v1379_v29 = vpop.xlane.xlu1 %1378 }
 0xc4c   :  { %v981_v30 = vadd.f32 1.1920929e-07, %v979_v11  ;;  %v1383_v31 = vmul.f32 0.03125, %v1379_v29 }
 0xc4e   :  { %v1385_v61 = vadd.f32 1.1920929e-07, %v1383_v31  ;;  %3220 = vrsqrt.f32 %v981_v30 }
 0xc4f   :  { %v977_v59 = vpop.xlane.xlu1 %976 }
 0xc50   :  { %3222 = vrsqrt.f32 %v1385_v61  ;;  %v980_v32 = vmul.f32 0.03125, %v977_v59 }
 0xc52   :  { %v982_v23 = vadd.f32 1.1920929e-07, %v980_v32 }
 0xc54   :  { %3224 = vrsqrt.f32 %v982_v23  ;;  %v3219_v40 = vpop.eup %3218 }
 0xc55   :  { %v1390_v9 = vmul.f32 %v3219_v40, %v3836_v5  ;;  %v3077_v5 = vpack.c.bf16 %v563_v54, %v562_v48 }
 0xc58   :  { %v3221_v22 = vpop.eup %3220 }
 0xc59   :  { %v985_v20 = vmul.f32 %v3221_v22, %v3842_v41 }
 0xc5a   :  { %v3223_v37 = vpop.eup %3222 }
 0xc5b   :  { %v1389_v39 = vmul.f32 %v3223_v37, %v3834_v27  ;;  %v564_v37 = vld [vmem:[#allocation8 + $0x60] sm:$0xff] }
 0xc5d   :  { %2777 = vmatprep.mubr.msk.f32.mxu0 %vm541_vm2, %v1389_v39  ;;  %v565_v39 = vld [vmem:[#allocation8 + $0x68] sm:$0xff] }
 0xc5e   :  { %2778 = vmatmul.mubr.msk.f32.vlgmr.msra.gmra.mrb[10].mxu0 %vm541_vm2, %v1390_v9  ;;  %v3225_v47 = vpop.eup %3224  ;;  %v3101_v9 = vpack.c.bf16 %v565_v39, %v564_v37 }
 0xc5f   :  { %3048 = vmatpush3.bf16.msra.mxu0 %v3045_v55  ;;  %2788 = vmatprep.mubr.msk.f32.mxu0 %vm541_vm2, %v985_v20  ;;  %v986_v27 = vmul.f32 %v3225_v47, %v3850_v33  ;;  %v567_v20 = vld [vmem:[#allocation8 + $0x78] sm:$0xff] }
 0xc60   :  { %3050 = vmatprep.subr.bf16.mxu0 %v3049_v0 }
 0xc63   :  { %3052 = vmatpush3.bf16.msra.mxu0 %v3049_v0  ;;  %v566_v0 = vld [vmem:[#allocation8 + $0x70] sm:$0xff] }
 0xc64   :  { %3074 = vmatprep.subr.bf16.mxu0 %v3073_v46  ;;  %v3105_v44 = vpack.c.bf16 %v567_v20, %v566_v0 }
 0xc66   :  { %2789 = vmatmul.mubr.msk.f32.vlgmr.msra.gmra.mrb[10].mxu0 %vm541_vm2, %v986_v27 }
 0xc67   :  { %3076 = vmatpush3.bf16.msra.mxu0 %v3073_v46 }
 0xc68   :  { %3078 = vmatprep.subr.bf16.mxu0 %v3077_v5 }
 0xc6b   :  { %3080 = vmatpush3.bf16.msra.mxu0 %v3077_v5 }
 0xc6c   :  { %3088 = vmatprep.subr.bf16.mxu0 %v3770_v35 }
 0xcad   :  { %v1964_v41 = vpop.xlane.xlu1 %1963 }
 0xcae   :  { %v1966_v49 = vmul.f32 0.03125, %v1964_v41  ;;  %v1961_v50 = vpop.xlane.xlu0 %1960 }
 0xcaf   :  { %v1965_v51 = vmul.f32 0.03125, %v1961_v50 }
 0xcb0   :  { %v1968_v52 = vadd.f32 1.1920929e-07, %v1966_v49 }
 0xcb1   :  { %v1967_v53 = vadd.f32 1.1920929e-07, %v1965_v51  ;;  %v2144_v17 = vpop.xlane.xlu1 %2143 }
 0xcb2   :  { %3226 = vrsqrt.f32 %v1968_v52  ;;  %v2146_v55 = vsub.f32 %v3855_v58, %v2144_v17  ;;  %v2141_v56 = vpop.xlane.xlu0 %2140 }
 0xcb3   :  { %3228 = vrsqrt.f32 %v1967_v53  ;;  %v2145_v33 = vsub.f32 %v3857_v34, %v2141_v56 }
 0xcb4   :  { %v2149_v62 = vmul.f32 1.442695, %v2146_v55 }
 0xcb5   :  { %v2147_v57 = vmul.f32 1.442695, %v2145_v33  ;;  %v2336_v60 = vpop.xlane.xlu1 %2335 }
 0xcb6   :  { %v2338_v63 = vsub.f32 %v3859_v38, %v2336_v60  ;;  %v2333_v1 = vpop.xlane.xlu0 %2332 }
 0xcb7   :  { %3230 = vpow2.f32 %v2147_v57  ;;  %v2337_v2 = vsub.f32 %v3861_v3, %v2333_v1 }
 0xcb8   :  { %3232 = vpow2.f32 %v2149_v62  ;;  %v2341_v6 = vmul.f32 1.442695, %v2338_v63 }
 0xcb9   :  { %v2339_v4 = vmul.f32 1.442695, %v2337_v2 }
 0xcbb   :  { %3234 = vpow2.f32 %v2339_v4 }
 0xcbc   :  { %v3227_v7 = vpop.eup %3226  ;;  %3236 = vpow2.f32 %v2341_v6 }
 0xcbd   :  { %v3229_v14 = vpop.eup %3228  ;;  %v1972_v34 = vmul.f32 %v3227_v7, %v3879_v8 }
 0xcbe   :  { %v1971_v58 = vmul.f32 %v3229_v14, %v3881_v10 }
 0xcc0   :  { %2827 = vmatprep.mubr.msk.f32.mxu0 %vm541_vm2, %v1971_v58 }
 0xcc1   :  { %v3231_v15 = vpop.eup %3230  ;;  %2828 = vmatmul.mubr.msk.f32.vlgmr.msra.gmra.mrb[10].mxu0 %vm541_vm2, %v1972_v34 }
 0xcc2   :  { %3090 = vmatpush3.bf16.msra.mxu0 %v3770_v35  ;;  %2841 = vmatprep.mubr.msk.f32.mxu0 %vm568_vm1, %v3231_v15  ;;  %v3233_v38 = vpop.eup %3232 }
 0xcc3   :  { %3098 = vmatprep.subr.bf16.mxu0 %v3770_v35 }
 0xcc5   :  { %v3235_v3 = vpop.eup %3234  ;;  %2842 = vmatmul.mubr.msk.f32.vlgmr.msra.gmra.mrb[12].mxu0 %vm568_vm1, %v3233_v38 }
 0xcc6   :  { %3100 = vmatpush3.bf16.msra.mxu0 %v3770_v35  ;;  %2855 = vmatprep.mubr.msk.f32.mxu0 %vm568_vm1, %v3235_v3  ;;  %v3237_v8 = vpop.eup %3236 }
 0xcc7   :  { %3102 = vmatprep.subr.bf16.mxu0 %v3101_v9 }
 0xcc9   :  { %2856 = vmatmul.mubr.msk.f32.vlgmr.msra.gmra.mrb[14].mxu0 %vm568_vm1, %v3237_v8 }
 0xcca   :  { %3104 = vmatpush3.bf16.msra.mxu0 %v3101_v9 }
 0xccb   :  { %3106 = vmatprep.subr.bf16.mxu0 %v3105_v44 }
 0xcce   :  { %3108 = vmatpush3.bf16.msra.mxu0 %v3105_v44 }
 0xd98   :  { %v2843_v10 = vpop.f32.mrb[12].mxu0 }
 0xd99   :  { %v2223_v18 = vpop.f32.mrb[13].mxu0 }
 0xd9c   :  { %v2857_v42 = vpop.f32.mrb[14].mxu0 }
 0xd9d   :  { %3238 = vrcp.f32 %v2857_v42  ;;  %v2415_v19 = vpop.f32.mrb[15].mxu0 }
 0xd9e   :  { %3240 = vrcp.f32 %v2415_v19 }
 0xd9f   :  { %3242 = vrcp.f32 %v2223_v18 }
 0xda0   :  { %3244 = vrcp.f32 %v2843_v10 }
 0xda7   :  { %v3239_v43 = vpop.eup %3238 }
 0xda8   :  { %v3241_v12 = vpop.eup %3240  ;;  %2435 = vperm.xlu1 %3161, %v3239_v43  }
 0xda9   :  { %2430 = vperm.xlu0 %3160, %v3241_v12   ;;  %v3243_v13 = vpop.eup %3242 }
 0xdaa   :  { %v3245_v24 = vpop.eup %3244 }
 0xdac   :  { %2238 = vperm.xlu1 %3161, %v3243_v13  }
 0xdad   :  { %2243 = vperm.xlu0 %3160, %v3245_v24  }
 0xe27   :  { %v2436_v35 = vpop.permute.xlu1 %2435 }
 0xe28   :  { %v2431_v25 = vpop.permute.xlu0 %2430  ;;  %v2439_v26 = vmul.f32 %v2857_v42, %v2436_v35 }
 0xe29   :  { %v2438_v28 = vmul.f32 %v2431_v25, %v2415_v19 }
 0xe2a   :  { %v2441_v61 = vmul.f32 %v2439_v26, %v3820_v16 }
 0xe2b   :  { %v2440_v11 = vmul.f32 %v2438_v28, %v3820_v16  ;;  %v2239_v29 = vpop.permute.xlu1 %2238 }
 0xe2c   :  { %v2246_v30 = vmul.f32 %v2239_v29, %v2223_v18  ;;  %v2244_v31 = vpop.permute.xlu0 %2243 }
 0xe2d   :  { %v2247_v59 = vmul.f32 %v2843_v10, %v2244_v31 }
 0xe2e   :  { %v2442_v32 = vsub.f32 %v2246_v30, %v2440_v11 }
 0xe2f   :  { %v2443_v23 = vsub.f32 %v2247_v59, %v2441_v61 }
 0xe30   :  { %v2444_v40 = vmul.f32 %v2442_v32, %v2442_v32 }
 0xe31   :  { %v2445_v22 = vmul.f32 %v2443_v23, %v2443_v23 }
 0xe32   :  { %v2446_v36 = vsel %vm541_vm2, %v2444_v40, 0.0 }
 0xe33   :  { %2447 = vadd.xlane.f32.xlu1 %v2446_v36  ;;  %v2449_v21 = vsel %vm541_vm2, %v2445_v22, 0.0 }
 0xe34   :  { %2450 = vadd.xlane.f32.xlu0 %v2449_v21 }
 0xec0   :  { %v2448_v16 = vpop.xlane.xlu1 %2447 }
 0xec1   :  { %v2452_v45 = vmul.f32 0.03125, %v2448_v16  ;;  %v2451_v46 = vpop.xlane.xlu0 %2450 }
 0xec2   :  { %v2453_v47 = vmul.f32 0.03125, %v2451_v46 }
 0xec3   :  { %v2454_v48 = vadd.f32 1.1920929e-07, %v2452_v45 }
 0xec4   :  { %v2455_v54 = vadd.f32 1.1920929e-07, %v2453_v47 }
 0xec5   :  { %3246 = vrsqrt.f32 %v2454_v48 }
 0xec6   :  { %3248 = vrsqrt.f32 %v2455_v54 }
 0xecf   :  { %v3247_v27 = vpop.eup %3246 }
 0xed0   :  { %v3249_v5 = vpop.eup %3248  ;;  %v2458_v41 = vmul.f32 %v3247_v27, %v2442_v32 }
 0xed1   :  { %v2459_v49 = vmul.f32 %v3249_v5, %v2443_v23 }
 0xed2   :  { %2866 = vmatprep.mubr.msk.f32.mxu0 %vm541_vm2, %v2458_v41 }
 0xed3   :  { %2867 = vmatmul.mubr.msk.f32.vlgmr.msra.gmra.mrb[10].mxu0 %vm541_vm2, %v2459_v49 }
 0xfa6   :  { %v2868_v50 = vpop.f32.mrb[10].mxu0 }
 0xfa7   :  { %2544 = vst [vmem:[#allocation15 + $0x8] sm:$0xff] %v2868_v50  ;;  %v2532_v51 = vpop.f32.mrb[11].mxu0 }
 0xfa8   :  { %2543 = vst [vmem:[#allocation15] sm:$0xff] %v2532_v51 }
 0xfa9   :  { %3415 = shalt.err (!%p3412_p4)
}
 0xfaa   :  { %s3416_s10 = scalar_lea.hbm %s3950_s8, 256 }
 0xfab   :  { %p3417_p5 = scmp.ne.s32.totalorder %s3950_s8, %s3416_s10  ;;  %p3420_p6 = scmp.lt.u32.totalorder %s3416_s10, %s3950_s8 }
 0xfad   :  { %p3422_p7 = pnand %p3420_p6, %p3417_p5 }
 0xfaf   :  { %3425 = shalt.err (!%p3422_p7)
}
 0xfb0   :  { %2556 = dma.vmem_to_hbm [thread:$0]  %s2551_s30, 256, %s3950_s8, [#allocation5], %s3442_s6, %s3442_s6, %s3443_s22  }
 0xfb1   :  { %3434 = dma.done.wait [#allocation5], 256  }
 0xfb2   :  { %3435 = vsyncadd [#allocation5], 4294967040 }
 0xfb3   :  { %2560 = vsyncpa [#allocation4], 1 }
 0xfb4   :  { %2561 = vsyncpa [#allocation7], 1 }
 0xfb5   :  { %2562 = vsyncpa [#allocation10], 1 }
 0xfb6   :  { %2563 = vsyncpa [#allocation13], 1 }
 0xfb7   :  { %2564 = vsyncpa [#allocation5], 1 }

</bundles_post_ra>
